<compile_context>
chip_gen: v6e
topology: v6e:2x2x1
jax: 0.10.0
libtpu: 0.0.40
codegen_flags: <defaults>
</compile_context>

<pallas_src>
import functools

import jax
import jax.numpy as jnp
import numpy as np
from jax import lax
from jax.experimental import pallas as pl
from jax.experimental.pallas import tpu as pltpu


# -----------------------------------------------------------------------------
# Pallas kernel: one encoder-layer forward for a single batch element [T, D].
# -----------------------------------------------------------------------------
def encoder_layer_kernel(x_ref, wqkv_ref, wo_ref, rel_ref, skew_ref,
                         w1_ref, b1_ref, w2_ref, b2_ref,
                         g1_ref, be1_ref, g2_ref, be2_ref, out_ref,
                         *, n_head, d_qkv, compute_dtype):
    T = x_ref.shape[1]
    H, A = n_head, d_qkv
    HA = H * A
    eps = 1e-5
    cd = compute_dtype

    xb = x_ref[0].astype(jnp.float32)                       # [T, D]

    # ---- fused QKV projection: one lane-dense matmul [T, D] @ [D, 3*H*A] ----
    # (W_q is pre-scaled by 1/sqrt(d_qkv) host-side; rel embeddings are rescaled
    #  by sqrt(d_qkv) so the positional logits are unchanged.)
    qkv = jnp.dot(xb.astype(cd), wqkv_ref[...].astype(cd),
                  preferred_element_type=jnp.float32)        # [T, 3*HA] f32

    def split_heads(mat):                                    # [T, HA] -> [H, T, A]
        return jnp.stack([mat[:, h * A:(h + 1) * A] for h in range(H)], axis=0)

    q3 = split_heads(qkv[:, 0 * HA:1 * HA]).astype(cd)       # [H, T, A]
    k3 = split_heads(qkv[:, 1 * HA:2 * HA]).astype(cd)
    v3 = split_heads(qkv[:, 2 * HA:3 * HA]).astype(cd)

    # ---- attention logits: content + learned relative positional ----
    content = jnp.einsum('hqa,hka->hqk', q3, k3,
                         preferred_element_type=jnp.float32)             # [H, T, T]
    posrel = jnp.einsum('hqa,hma->hqm', q3, rel_ref[...].astype(cd),
                        preferred_element_type=jnp.float32)              # [H, T, 2T-1]
    # vectorized relative->absolute skew: pos[h,t,j] = posrel[h,t, j-t+T-1]
    # skew_ref is a static one-hot [T, T, 2T-1] computed host-side.
    pos = jnp.sum(posrel[:, :, None, :] * skew_ref[...][None, :, :, :], axis=-1)
    logits = content + pos                                                # [H, T, T]

    # ---- softmax over keys (exp + reciprocal on the EUP, no VALU divide) ----
    mx = jnp.max(logits, axis=-1, keepdims=True)
    e = jnp.exp(logits - mx)
    denom = jnp.sum(e, axis=-1, keepdims=True)
    probs = e * pl.reciprocal(denom, approx=True)                         # [H, T, T]

    # ---- attention output + output projection (head-batched, then summed) ----
    o3 = jnp.einsum('hqk,hka->hqa', probs.astype(cd), v3,
                    preferred_element_type=jnp.float32)                   # [H, T, A]
    attn = jnp.einsum('hqa,had->hqd', o3.astype(cd), wo_ref[...].astype(cd),
                      preferred_element_type=jnp.float32).sum(axis=0)     # [T, D]

    # ---- residual + LayerNorm 1 (f32) ----
    s = xb + attn
    mu = jnp.mean(s, axis=-1, keepdims=True)
    var = jnp.mean((s - mu) ** 2, axis=-1, keepdims=True)
    s = (s - mu) * lax.rsqrt(var + eps) * g1_ref[...] + be1_ref[...]

    # ---- feed-forward: relu(s @ W1 + b1) @ W2 + b2 ----
    h1 = jnp.dot(s.astype(cd), w1_ref[...].astype(cd),
                 preferred_element_type=jnp.float32) + b1_ref[...]
    h1 = jnp.maximum(h1, 0.0)
    h2 = jnp.dot(h1.astype(cd), w2_ref[...].astype(cd),
                 preferred_element_type=jnp.float32) + b2_ref[...]

    # ---- residual + LayerNorm 2 (f32) ----
    s2 = s + h2
    mu2 = jnp.mean(s2, axis=-1, keepdims=True)
    var2 = jnp.mean((s2 - mu2) ** 2, axis=-1, keepdims=True)
    out = (s2 - mu2) * lax.rsqrt(var2 + eps) * g2_ref[...] + be2_ref[...]

    out_ref[0] = out.astype(out_ref.dtype)


def transformer_encoder_layer(x_tbd, params, *, n_head, d_qkv,
                              compute_dtype=jnp.float32):
    """x_tbd: [T, B, d_model] float32 (time-major, matching the PyTorch module)."""
    T, B, D = x_tbd.shape
    H, A = n_head, d_qkv
    M = 2 * T - 1
    F = params["w1"].shape[1]

    x = jnp.transpose(x_tbd, (1, 0, 2))                     # [B, T, D]

    kernel = functools.partial(encoder_layer_kernel, n_head=H, d_qkv=A,
                               compute_dtype=compute_dtype)

    def full(shape):
        return pl.BlockSpec(shape, lambda b: (0,) * len(shape))

    out = pl.pallas_call(
        kernel,
        out_shape=jax.ShapeDtypeStruct((B, T, D), jnp.float32),
        grid=(B,),
        in_specs=[
            pl.BlockSpec((1, T, D), lambda b: (b, 0, 0)),    # x
            full((D, 3 * H * A)),                            # wqkv (Wq pre-scaled)
            full((H, A, D)),                                 # wo
            full((H, M, A)),                                 # rel embeddings (rescaled)
            full((T, T, M)),                                 # one-hot skew tensor
            full((D, F)), full((1, F)),                      # w1, b1
            full((F, D)), full((1, D)),                      # w2, b2
            full((1, D)), full((1, D)),                      # g1, be1
            full((1, D)), full((1, D)),                      # g2, be2
        ],
        out_specs=pl.BlockSpec((1, T, D), lambda b: (b, 0, 0)),
        compiler_params=pltpu.CompilerParams(
            dimension_semantics=("parallel",)),
    )(x, params["wqkv"], params["wo"], params["rel_s"], params["skew"],
      params["w1"], params["b1"], params["w2"], params["b2"],
      params["g1"], params["be1"], params["g2"], params["be2"])

    return jnp.transpose(out, (1, 0, 2))                     # back to [T, B, D]


# -----------------------------------------------------------------------------
# Pure-JAX reference mirroring the PyTorch module (dropout = identity).
# -----------------------------------------------------------------------------
def _rel_to_abs_unmasked(x):
    # x: [L, BH, 2L-1]  ->  [BH, L, L]
    L, BH, _ = x.shape
    x = jnp.pad(x, ((0, 0), (0, 0), (0, 1)))
    x = jnp.transpose(x, (1, 0, 2)).reshape(BH, L * 2 * L)
    x = jnp.pad(x, ((0, 0), (0, L - 1)))
    x = x.reshape(BH, L + 1, 2 * L - 1)
    return x[:, :L, L - 1:]


def _layernorm(x, g, b, eps=1e-5):
    mu = jnp.mean(x, axis=-1, keepdims=True)
    var = jnp.mean((x - mu) ** 2, axis=-1, keepdims=True)
    return (x - mu) / jnp.sqrt(var + eps) * g + b


def reference_forward(src, params, n_head, d_qkv):
    wq, wk, wv, wo = params["wq"], params["wk"], params["wv"], params["wo"]
    rel_used = params["rel_used"]                            # [H, 2T-1, A]
    q = jnp.einsum('tbf,hfa->bhta', src, wq)
    k = jnp.einsum('tbf,hfa->bhta', src, wk)
    v = jnp.einsum('tbf,hfa->bhta', src, wv)
    logits = jnp.einsum('bhqa,bhka->bhqk', q, k) / (d_qkv ** 0.5)

    q_pos = jnp.transpose(q, (2, 0, 1, 3))                   # [T, B, H, A]
    T, B, H, A = q_pos.shape
    pos_logits = jnp.einsum('lbhd,hmd->lbhm', q_pos, rel_used)
    pos_logits = pos_logits.reshape(T, B * H, 2 * T - 1)
    pos = _rel_to_abs_unmasked(pos_logits).reshape(B, H, T, T)
    logits = logits + pos

    probs = jax.nn.softmax(logits, axis=-1)
    o = jnp.einsum('bhqk,bhka->bhqa', probs, v)
    attn = jnp.einsum('bhta,haf->tbf', o, wo)

    s = _layernorm(src + attn, params["g1"][0], params["be1"][0])
    ff = jnp.maximum(s @ params["w1"] + params["b1"][0], 0.0) @ params["w2"] + params["b2"][0]
    s = _layernorm(s + ff, params["g2"][0], params["be2"][0])
    return s


# -----------------------------------------------------------------------------
# Deterministic parameter init + run
# -----------------------------------------------------------------------------
if __name__ == "__main__":
    T, B = 8, 2
    d_model, n_head = 32, 4
    d_qkv = d_model // n_head
    dim_ff = 64
    max_rel = 100                                            # module default

    key = jax.random.PRNGKey(0)
    ks = jax.random.split(key, 12)

    xavier = (2.0 / (d_model + d_qkv)) ** 0.5
    wq = jax.random.normal(ks[0], (n_head, d_model, d_qkv), jnp.float32) * xavier
    wk = jax.random.normal(ks[1], (n_head, d_model, d_qkv), jnp.float32) * xavier
    wv = jax.random.normal(ks[2], (n_head, d_model, d_qkv), jnp.float32) * xavier
    wo = jax.random.normal(ks[3], (n_head, d_qkv, d_model), jnp.float32) * xavier

    # LearnedRelativePositionalEmbedding: [H, 2*max_rel-1, d_qkv] (unmasked, add_to_values=False)
    rel_emb = jax.random.normal(ks[4], (n_head, 2 * max_rel - 1, d_qkv),
                                jnp.float32) * (d_qkv ** -0.5)
    # get_embeddings_for_query(T): T < max_rel -> slice [max_rel-T : max_rel-T + 2T-1]
    start = max_rel - T
    rel_used = rel_emb[:, start:start + 2 * T - 1, :]        # [H, 2T-1, A]

    w1 = jax.random.normal(ks[5], (d_model, dim_ff), jnp.float32) * (1.0 / d_model ** 0.5)
    b1 = jax.random.normal(ks[6], (1, dim_ff), jnp.float32) * 0.01
    w2 = jax.random.normal(ks[7], (dim_ff, d_model), jnp.float32) * (1.0 / dim_ff ** 0.5)
    b2 = jax.random.normal(ks[8], (1, d_model), jnp.float32) * 0.01

    g1 = jnp.ones((1, d_model), jnp.float32)
    be1 = jnp.zeros((1, d_model), jnp.float32)
    g2 = jnp.ones((1, d_model), jnp.float32)
    be2 = jnp.zeros((1, d_model), jnp.float32)

    # ---- kernel-side weight prep (host, once) ----
    scale = d_qkv ** -0.5
    wq_flat = jnp.transpose(wq, (1, 0, 2)).reshape(d_model, n_head * d_qkv) * scale
    wk_flat = jnp.transpose(wk, (1, 0, 2)).reshape(d_model, n_head * d_qkv)
    wv_flat = jnp.transpose(wv, (1, 0, 2)).reshape(d_model, n_head * d_qkv)
    wqkv = jnp.concatenate([wq_flat, wk_flat, wv_flat], axis=1)      # [D, 3*H*A]
    rel_s = rel_used * (d_qkv ** 0.5)                                # compensate folded scale

    # static one-hot skew tensor: skew[t, j, m] = (m == j - t + T - 1)
    t_idx = np.arange(T)[:, None, None]
    j_idx = np.arange(T)[None, :, None]
    m_idx = np.arange(2 * T - 1)[None, None, :]
    skew = jnp.asarray((m_idx == (j_idx - t_idx + T - 1)).astype(np.float32))

    params = dict(wq=wq, wk=wk, wv=wv, wo=wo, rel_used=rel_used,
                  wqkv=wqkv, rel_s=rel_s, skew=skew,
                  w1=w1, b1=b1, w2=w2, b2=b2, g1=g1, be1=be1, g2=g2, be2=be2)

    # input: [T, B, d_model]
    x = jax.random.normal(ks[9], (T, B, d_model), jnp.float32)

    ref = reference_forward(x, params, n_head, d_qkv)

    # f32 matmul operands (exact check; approx reciprocal -> slightly loosened tol)
    out = transformer_encoder_layer(x, params, n_head=n_head, d_qkv=d_qkv,
                                    compute_dtype=jnp.float32)
    out = jax.block_until_ready(out)
    np.testing.assert_allclose(np.asarray(out), np.asarray(ref), rtol=5e-3, atol=5e-3)

    # bf16 matmul operands with f32 accumulation (recommended on v6e/v7x at scale)
    out_bf16 = transformer_encoder_layer(x, params, n_head=n_head, d_qkv=d_qkv,
                                         compute_dtype=jnp.bfloat16)
    out_bf16 = jax.block_until_ready(out_bf16)
    np.testing.assert_allclose(np.asarray(out_bf16), np.asarray(ref), rtol=1e-1, atol=1e-1)

    print("KERNEL_OK")
</pallas_src>

<mosaic_0001>
module attributes {stable_mosaic.version = 11 : i64} {
  func.func @encoder_layer_kernel(%arg0: i32, %arg1: memref<1x8x32xf32, #tpu.memory_space<vmem>>, %arg2: memref<32x96xf32, #tpu.memory_space<vmem>>, %arg3: memref<4x8x32xf32, #tpu.memory_space<vmem>>, %arg4: memref<4x15x8xf32, #tpu.memory_space<vmem>>, %arg5: memref<8x8x15xf32, #tpu.memory_space<vmem>>, %arg6: memref<32x64xf32, #tpu.memory_space<vmem>>, %arg7: memref<1x64xf32, #tpu.memory_space<vmem>>, %arg8: memref<64x32xf32, #tpu.memory_space<vmem>>, %arg9: memref<1x32xf32, #tpu.memory_space<vmem>>, %arg10: memref<1x32xf32, #tpu.memory_space<vmem>>, %arg11: memref<1x32xf32, #tpu.memory_space<vmem>>, %arg12: memref<1x32xf32, #tpu.memory_space<vmem>>, %arg13: memref<1x32xf32, #tpu.memory_space<vmem>>, %arg14: memref<1x8x32xf32, #tpu.memory_space<vmem>>) attributes {dimension_semantics = [#tpu.dimension_semantics<parallel>], iteration_bounds = array<i64: 2>, scalar_prefetch = 0 : i64, scratch_operands = 0 : i64, tpu.core_type = #tpu.core_type<tc>, window_params = [{transform_indices = @transform_0, window_bounds = array<i64: 1, 8, 32>}, {pipeline_mode = #tpu.pipeline_mode<synchronous>, transform_indices = @transform_1, window_bounds = array<i64: 32, 96>}, {pipeline_mode = #tpu.pipeline_mode<synchronous>, transform_indices = @transform_2, window_bounds = array<i64: 4, 8, 32>}, {pipeline_mode = #tpu.pipeline_mode<synchronous>, transform_indices = @transform_3, window_bounds = array<i64: 4, 15, 8>}, {pipeline_mode = #tpu.pipeline_mode<synchronous>, transform_indices = @transform_4, window_bounds = array<i64: 8, 8, 15>}, {pipeline_mode = #tpu.pipeline_mode<synchronous>, transform_indices = @transform_5, window_bounds = array<i64: 32, 64>}, {pipeline_mode = #tpu.pipeline_mode<synchronous>, transform_indices = @transform_6, window_bounds = array<i64: 1, 64>}, {pipeline_mode = #tpu.pipeline_mode<synchronous>, transform_indices = @transform_7, window_bounds = array<i64: 64, 32>}, {pipeline_mode = #tpu.pipeline_mode<synchronous>, transform_indices = @transform_8, window_bounds = array<i64: 1, 32>}, {pipeline_mode = #tpu.pipeline_mode<synchronous>, transform_indices = @transform_9, window_bounds = array<i64: 1, 32>}, {pipeline_mode = #tpu.pipeline_mode<synchronous>, transform_indices = @transform_10, window_bounds = array<i64: 1, 32>}, {pipeline_mode = #tpu.pipeline_mode<synchronous>, transform_indices = @transform_11, window_bounds = array<i64: 1, 32>}, {pipeline_mode = #tpu.pipeline_mode<synchronous>, transform_indices = @transform_12, window_bounds = array<i64: 1, 32>}, {transform_indices = @transform_13, window_bounds = array<i64: 1, 8, 32>}]} {
    %c0 = arith.constant 0 : index
    %c0_0 = arith.constant 0 : index
    %c0_1 = arith.constant 0 : index
    %0 = vector.load %arg1[%c0, %c0_0, %c0_1] : memref<1x8x32xf32, #tpu.memory_space<vmem>>, vector<1x8x32xf32>
    %1 = vector.shape_cast %0 : vector<1x8x32xf32> to vector<8x32xf32>
    %c0_2 = arith.constant 0 : index
    %c0_3 = arith.constant 0 : index
    %2 = vector.load %arg2[%c0_2, %c0_3] : memref<32x96xf32, #tpu.memory_space<vmem>>, vector<32x96xf32>
    %cst = arith.constant dense<0.000000e+00> : vector<8x96xf32>
    %3 = tpu.matmul %1, %2, %cst {dimension_numbers = #tpu.dot_dimension_numbers<[1], [0], [0], [1], [0, 0, 1, 1], [], []>} : vector<8x32xf32>, vector<32x96xf32>, vector<8x96xf32> -> vector<8x96xf32>
    %4 = vector.extract_strided_slice %3 {offsets = [0, 0], sizes = [8, 32], strides = [1, 1]} : vector<8x96xf32> to vector<8x32xf32>
    %5 = vector.extract_strided_slice %4 {offsets = [0, 0], sizes = [8, 8], strides = [1, 1]} : vector<8x32xf32> to vector<8x8xf32>
    %6 = vector.extract_strided_slice %4 {offsets = [0, 8], sizes = [8, 8], strides = [1, 1]} : vector<8x32xf32> to vector<8x8xf32>
    %7 = vector.extract_strided_slice %4 {offsets = [0, 16], sizes = [8, 8], strides = [1, 1]} : vector<8x32xf32> to vector<8x8xf32>
    %8 = vector.extract_strided_slice %4 {offsets = [0, 24], sizes = [8, 8], strides = [1, 1]} : vector<8x32xf32> to vector<8x8xf32>
    %9 = vector.shape_cast %5 : vector<8x8xf32> to vector<1x8x8xf32>
    %10 = vector.shape_cast %6 : vector<8x8xf32> to vector<1x8x8xf32>
    %11 = vector.shape_cast %7 : vector<8x8xf32> to vector<1x8x8xf32>
    %12 = vector.shape_cast %8 : vector<8x8xf32> to vector<1x8x8xf32>
    %13 = tpu.concatenate %9, %10, %11, %12 in 0 : vector<1x8x8xf32>, vector<1x8x8xf32>, vector<1x8x8xf32>, vector<1x8x8xf32> -> vector<4x8x8xf32>
    %14 = vector.extract_strided_slice %3 {offsets = [0, 32], sizes = [8, 32], strides = [1, 1]} : vector<8x96xf32> to vector<8x32xf32>
    %15 = vector.extract_strided_slice %14 {offsets = [0, 0], sizes = [8, 8], strides = [1, 1]} : vector<8x32xf32> to vector<8x8xf32>
    %16 = vector.extract_strided_slice %14 {offsets = [0, 8], sizes = [8, 8], strides = [1, 1]} : vector<8x32xf32> to vector<8x8xf32>
    %17 = vector.extract_strided_slice %14 {offsets = [0, 16], sizes = [8, 8], strides = [1, 1]} : vector<8x32xf32> to vector<8x8xf32>
    %18 = vector.extract_strided_slice %14 {offsets = [0, 24], sizes = [8, 8], strides = [1, 1]} : vector<8x32xf32> to vector<8x8xf32>
    %19 = vector.shape_cast %15 : vector<8x8xf32> to vector<1x8x8xf32>
    %20 = vector.shape_cast %16 : vector<8x8xf32> to vector<1x8x8xf32>
    %21 = vector.shape_cast %17 : vector<8x8xf32> to vector<1x8x8xf32>
    %22 = vector.shape_cast %18 : vector<8x8xf32> to vector<1x8x8xf32>
    %23 = tpu.concatenate %19, %20, %21, %22 in 0 : vector<1x8x8xf32>, vector<1x8x8xf32>, vector<1x8x8xf32>, vector<1x8x8xf32> -> vector<4x8x8xf32>
    %24 = vector.extract_strided_slice %3 {offsets = [0, 64], sizes = [8, 32], strides = [1, 1]} : vector<8x96xf32> to vector<8x32xf32>
    %25 = vector.extract_strided_slice %24 {offsets = [0, 0], sizes = [8, 8], strides = [1, 1]} : vector<8x32xf32> to vector<8x8xf32>
    %26 = vector.extract_strided_slice %24 {offsets = [0, 8], sizes = [8, 8], strides = [1, 1]} : vector<8x32xf32> to vector<8x8xf32>
    %27 = vector.extract_strided_slice %24 {offsets = [0, 16], sizes = [8, 8], strides = [1, 1]} : vector<8x32xf32> to vector<8x8xf32>
    %28 = vector.extract_strided_slice %24 {offsets = [0, 24], sizes = [8, 8], strides = [1, 1]} : vector<8x32xf32> to vector<8x8xf32>
    %29 = vector.shape_cast %25 : vector<8x8xf32> to vector<1x8x8xf32>
    %30 = vector.shape_cast %26 : vector<8x8xf32> to vector<1x8x8xf32>
    %31 = vector.shape_cast %27 : vector<8x8xf32> to vector<1x8x8xf32>
    %32 = vector.shape_cast %28 : vector<8x8xf32> to vector<1x8x8xf32>
    %33 = tpu.concatenate %29, %30, %31, %32 in 0 : vector<1x8x8xf32>, vector<1x8x8xf32>, vector<1x8x8xf32>, vector<1x8x8xf32> -> vector<4x8x8xf32>
    "tpu.trace_start"() <{level = 10 : i32, message = "hqa,hka->hqk"}> : () -> ()
    %cst_4 = arith.constant dense<0.000000e+00> : vector<4x8x8xf32>
    %34 = tpu.matmul %13, %23, %cst_4 {dimension_numbers = #tpu.dot_dimension_numbers<[2], [2], [1], [1], [0, 0, 0, 1, 1, 1], [0], [0]>} : vector<4x8x8xf32>, vector<4x8x8xf32>, vector<4x8x8xf32> -> vector<4x8x8xf32>
    "tpu.trace_stop"() : () -> ()
    %c0_5 = arith.constant 0 : index
    %c0_6 = arith.constant 0 : index
    %c0_7 = arith.constant 0 : index
    %35 = vector.load %arg4[%c0_5, %c0_6, %c0_7] : memref<4x15x8xf32, #tpu.memory_space<vmem>>, vector<4x15x8xf32>
    "tpu.trace_start"() <{level = 10 : i32, message = "hqa,hma->hqm"}> : () -> ()
    %cst_8 = arith.constant dense<0.000000e+00> : vector<4x8x15xf32>
    %36 = tpu.matmul %13, %35, %cst_8 {dimension_numbers = #tpu.dot_dimension_numbers<[2], [2], [1], [1], [0, 0, 0, 1, 1, 1], [0], [0]>} : vector<4x8x8xf32>, vector<4x15x8xf32>, vector<4x8x15xf32> -> vector<4x8x15xf32>
    "tpu.trace_stop"() : () -> ()
    %37 = vector.shape_cast %36 : vector<4x8x15xf32> to vector<4x8x1x15xf32>
    %c0_9 = arith.constant 0 : index
    %c0_10 = arith.constant 0 : index
    %c0_11 = arith.constant 0 : index
    %38 = vector.load %arg5[%c0_9, %c0_10, %c0_11] : memref<8x8x15xf32, #tpu.memory_space<vmem>>, vector<8x8x15xf32>
    %39 = vector.shape_cast %38 : vector<8x8x15xf32> to vector<1x8x8x15xf32>
    %40 = vector.broadcast %37 : vector<4x8x1x15xf32> to vector<4x8x8x15xf32>
    %41 = vector.broadcast %39 : vector<1x8x8x15xf32> to vector<4x8x8x15xf32>
    %42 = arith.mulf %40, %41 : vector<4x8x8x15xf32>
    %cst_12 = arith.constant dense<0.000000e+00> : vector<4x8x8xf32>
    %43 = vector.multi_reduction <add>, %42, %cst_12 [3] : vector<4x8x8x15xf32> to vector<4x8x8xf32>
    %44 = arith.addf %34, %43 : vector<4x8x8xf32>
    %cst_13 = arith.constant dense<0xFF800000> : vector<4x8xf32>
    %45 = vector.multi_reduction <maximumf>, %44, %cst_13 [2] : vector<4x8x8xf32> to vector<4x8xf32>
    %46 = vector.shape_cast %45 : vector<4x8xf32> to vector<4x8x1xf32>
    %47 = vector.broadcast %46 : vector<4x8x1xf32> to vector<4x8x8xf32>
    %48 = arith.subf %44, %47 : vector<4x8x8xf32>
    %49 = math.exp %48 : vector<4x8x8xf32>
    %cst_14 = arith.constant dense<0.000000e+00> : vector<4x8xf32>
    %50 = vector.multi_reduction <add>, %49, %cst_14 [2] : vector<4x8x8xf32> to vector<4x8xf32>
    %51 = vector.shape_cast %50 : vector<4x8xf32> to vector<4x8x1xf32>
    %52 = tpu.reciprocal %51 {approx = true} : vector<4x8x1xf32> -> vector<4x8x1xf32>
    %53 = vector.broadcast %52 : vector<4x8x1xf32> to vector<4x8x8xf32>
    %54 = arith.mulf %49, %53 : vector<4x8x8xf32>
    "tpu.trace_start"() <{level = 10 : i32, message = "hqk,hka->hqa"}> : () -> ()
    %cst_15 = arith.constant dense<0.000000e+00> : vector<4x8x8xf32>
    %55 = tpu.matmul %54, %33, %cst_15 {dimension_numbers = #tpu.dot_dimension_numbers<[2], [1], [1], [2], [0, 0, 0, 1, 1, 2], [0], [0]>} : vector<4x8x8xf32>, vector<4x8x8xf32>, vector<4x8x8xf32> -> vector<4x8x8xf32>
    "tpu.trace_stop"() : () -> ()
    %c0_16 = arith.constant 0 : index
    %c0_17 = arith.constant 0 : index
    %c0_18 = arith.constant 0 : index
    %56 = vector.load %arg3[%c0_16, %c0_17, %c0_18] : memref<4x8x32xf32, #tpu.memory_space<vmem>>, vector<4x8x32xf32>
    "tpu.trace_start"() <{level = 10 : i32, message = "hqa,had->hqd"}> : () -> ()
    %cst_19 = arith.constant dense<0.000000e+00> : vector<4x8x32xf32>
    %57 = tpu.matmul %55, %56, %cst_19 {dimension_numbers = #tpu.dot_dimension_numbers<[2], [1], [1], [2], [0, 0, 0, 1, 1, 2], [0], [0]>} : vector<4x8x8xf32>, vector<4x8x32xf32>, vector<4x8x32xf32> -> vector<4x8x32xf32>
    "tpu.trace_stop"() : () -> ()
    %cst_20 = arith.constant dense<0.000000e+00> : vector<8x32xf32>
    %58 = vector.multi_reduction <add>, %57, %cst_20 [0] : vector<4x8x32xf32> to vector<8x32xf32>
    %59 = arith.addf %1, %58 : vector<8x32xf32>
    %cst_21 = arith.constant dense<0.000000e+00> : vector<8xf32>
    %60 = vector.multi_reduction <add>, %59, %cst_21 [1] : vector<8x32xf32> to vector<8xf32>
    %61 = vector.shape_cast %60 : vector<8xf32> to vector<8x1xf32>
    %cst_22 = arith.constant 3.200000e+01 : f32
    %62 = vector.broadcast %cst_22 : f32 to vector<8x1xf32>
    %63 = arith.divf %61, %62 : vector<8x1xf32>
    %64 = vector.broadcast %63 : vector<8x1xf32> to vector<8x32xf32>
    %65 = arith.subf %59, %64 : vector<8x32xf32>
    %66 = arith.mulf %65, %65 : vector<8x32xf32>
    %cst_23 = arith.constant dense<0.000000e+00> : vector<8xf32>
    %67 = vector.multi_reduction <add>, %66, %cst_23 [1] : vector<8x32xf32> to vector<8xf32>
    %68 = vector.shape_cast %67 : vector<8xf32> to vector<8x1xf32>
    %cst_24 = arith.constant 3.200000e+01 : f32
    %69 = vector.broadcast %cst_24 : f32 to vector<8x1xf32>
    %70 = arith.divf %68, %69 : vector<8x1xf32>
    %71 = vector.broadcast %63 : vector<8x1xf32> to vector<8x32xf32>
    %72 = arith.subf %59, %71 : vector<8x32xf32>
    %cst_25 = arith.constant 9.99999974E-6 : f32
    %73 = vector.broadcast %cst_25 : f32 to vector<8x1xf32>
    %74 = arith.addf %70, %73 : vector<8x1xf32>
    %75 = math.rsqrt %74 : vector<8x1xf32>
    %76 = vector.broadcast %75 : vector<8x1xf32> to vector<8x32xf32>
    %77 = arith.mulf %72, %76 : vector<8x32xf32>
    %c0_26 = arith.constant 0 : index
    %c0_27 = arith.constant 0 : index
    %78 = vector.load %arg10[%c0_26, %c0_27] : memref<1x32xf32, #tpu.memory_space<vmem>>, vector<1x32xf32>
    %79 = vector.broadcast %78 : vector<1x32xf32> to vector<8x32xf32>
    %80 = arith.mulf %77, %79 : vector<8x32xf32>
    %c0_28 = arith.constant 0 : index
    %c0_29 = arith.constant 0 : index
    %81 = vector.load %arg11[%c0_28, %c0_29] : memref<1x32xf32, #tpu.memory_space<vmem>>, vector<1x32xf32>
    %82 = vector.broadcast %81 : vector<1x32xf32> to vector<8x32xf32>
    %83 = arith.addf %80, %82 : vector<8x32xf32>
    %c0_30 = arith.constant 0 : index
    %c0_31 = arith.constant 0 : index
    %84 = vector.load %arg6[%c0_30, %c0_31] : memref<32x64xf32, #tpu.memory_space<vmem>>, vector<32x64xf32>
    %cst_32 = arith.constant dense<0.000000e+00> : vector<8x64xf32>
    %85 = tpu.matmul %83, %84, %cst_32 {dimension_numbers = #tpu.dot_dimension_numbers<[1], [0], [0], [1], [0, 0, 1, 1], [], []>} : vector<8x32xf32>, vector<32x64xf32>, vector<8x64xf32> -> vector<8x64xf32>
    %c0_33 = arith.constant 0 : index
    %c0_34 = arith.constant 0 : index
    %86 = vector.load %arg7[%c0_33, %c0_34] : memref<1x64xf32, #tpu.memory_space<vmem>>, vector<1x64xf32>
    %87 = vector.broadcast %86 : vector<1x64xf32> to vector<8x64xf32>
    %88 = arith.addf %85, %87 : vector<8x64xf32>
    %cst_35 = arith.constant 0.000000e+00 : f32
    %89 = vector.broadcast %cst_35 : f32 to vector<8x64xf32>
    %90 = arith.maximumf %88, %89 : vector<8x64xf32>
    %c0_36 = arith.constant 0 : index
    %c0_37 = arith.constant 0 : index
    %91 = vector.load %arg8[%c0_36, %c0_37] : memref<64x32xf32, #tpu.memory_space<vmem>>, vector<64x32xf32>
    %cst_38 = arith.constant dense<0.000000e+00> : vector<8x32xf32>
    %92 = tpu.matmul %90, %91, %cst_38 {dimension_numbers = #tpu.dot_dimension_numbers<[1], [0], [0], [1], [0, 0, 1, 1], [], []>} : vector<8x64xf32>, vector<64x32xf32>, vector<8x32xf32> -> vector<8x32xf32>
    %c0_39 = arith.constant 0 : index
    %c0_40 = arith.constant 0 : index
    %93 = vector.load %arg9[%c0_39, %c0_40] : memref<1x32xf32, #tpu.memory_space<vmem>>, vector<1x32xf32>
    %94 = vector.broadcast %93 : vector<1x32xf32> to vector<8x32xf32>
    %95 = arith.addf %92, %94 : vector<8x32xf32>
    %96 = arith.addf %83, %95 : vector<8x32xf32>
    %cst_41 = arith.constant dense<0.000000e+00> : vector<8xf32>
    %97 = vector.multi_reduction <add>, %96, %cst_41 [1] : vector<8x32xf32> to vector<8xf32>
    %98 = vector.shape_cast %97 : vector<8xf32> to vector<8x1xf32>
    %cst_42 = arith.constant 3.200000e+01 : f32
    %99 = vector.broadcast %cst_42 : f32 to vector<8x1xf32>
    %100 = arith.divf %98, %99 : vector<8x1xf32>
    %101 = vector.broadcast %100 : vector<8x1xf32> to vector<8x32xf32>
    %102 = arith.subf %96, %101 : vector<8x32xf32>
    %103 = arith.mulf %102, %102 : vector<8x32xf32>
    %cst_43 = arith.constant dense<0.000000e+00> : vector<8xf32>
    %104 = vector.multi_reduction <add>, %103, %cst_43 [1] : vector<8x32xf32> to vector<8xf32>
    %105 = vector.shape_cast %104 : vector<8xf32> to vector<8x1xf32>
    %cst_44 = arith.constant 3.200000e+01 : f32
    %106 = vector.broadcast %cst_44 : f32 to vector<8x1xf32>
    %107 = arith.divf %105, %106 : vector<8x1xf32>
    %108 = vector.broadcast %100 : vector<8x1xf32> to vector<8x32xf32>
    %109 = arith.subf %96, %108 : vector<8x32xf32>
    %cst_45 = arith.constant 9.99999974E-6 : f32
    %110 = vector.broadcast %cst_45 : f32 to vector<8x1xf32>
    %111 = arith.addf %107, %110 : vector<8x1xf32>
    %112 = math.rsqrt %111 : vector<8x1xf32>
    %113 = vector.broadcast %112 : vector<8x1xf32> to vector<8x32xf32>
    %114 = arith.mulf %109, %113 : vector<8x32xf32>
    %c0_46 = arith.constant 0 : index
    %c0_47 = arith.constant 0 : index
    %115 = vector.load %arg12[%c0_46, %c0_47] : memref<1x32xf32, #tpu.memory_space<vmem>>, vector<1x32xf32>
    %116 = vector.broadcast %115 : vector<1x32xf32> to vector<8x32xf32>
    %117 = arith.mulf %114, %116 : vector<8x32xf32>
    %c0_48 = arith.constant 0 : index
    %c0_49 = arith.constant 0 : index
    %118 = vector.load %arg13[%c0_48, %c0_49] : memref<1x32xf32, #tpu.memory_space<vmem>>, vector<1x32xf32>
    %119 = vector.broadcast %118 : vector<1x32xf32> to vector<8x32xf32>
    %120 = arith.addf %117, %119 : vector<8x32xf32>
    %c0_50 = arith.constant 0 : index
    %c0_51 = arith.constant 0 : index
    %c0_52 = arith.constant 0 : index
    %121 = vector.load %arg14[%c0_50, %c0_51, %c0_52] : memref<1x8x32xf32, #tpu.memory_space<vmem>>, vector<1x8x32xf32>
    %122 = vector.shape_cast %121 : vector<1x8x32xf32> to vector<8x32xf32>
    %123 = vector.shape_cast %120 : vector<8x32xf32> to vector<1x8x32xf32>
    tpu.vector_store %arg14[%c0_50, %c0_51, %c0_52], %123 {strides = array<i32>} : memref<1x8x32xf32, #tpu.memory_space<vmem>>, vector<1x8x32xf32>,
    return
  }
  func.func @transform_0(%arg0: i32) -> (i32, i32, i32) {
    %c0_i32 = arith.constant 0 : i32
    %c0_i32_0 = arith.constant 0 : i32
    %c0_i32_1 = arith.constant 0 : i32
    return %arg0, %c0_i32, %c0_i32_0 : i32, i32, i32
  }
  func.func @transform_1(%arg0: i32) -> (i32, i32) {
    %c0_i32 = arith.constant 0 : i32
    %c0_i32_0 = arith.constant 0 : i32
    %c0_i32_1 = arith.constant 0 : i32
    return %c0_i32, %c0_i32_0 : i32, i32
  }
  func.func @transform_2(%arg0: i32) -> (i32, i32, i32) {
    %c0_i32 = arith.constant 0 : i32
    %c0_i32_0 = arith.constant 0 : i32
    %c0_i32_1 = arith.constant 0 : i32
    %c0_i32_2 = arith.constant 0 : i32
    return %c0_i32, %c0_i32_0, %c0_i32_1 : i32, i32, i32
  }
  func.func @transform_3(%arg0: i32) -> (i32, i32, i32) {
    %c0_i32 = arith.constant 0 : i32
    %c0_i32_0 = arith.constant 0 : i32
    %c0_i32_1 = arith.constant 0 : i32
    %c0_i32_2 = arith.constant 0 : i32
    return %c0_i32, %c0_i32_0, %c0_i32_1 : i32, i32, i32
  }
  func.func @transform_4(%arg0: i32) -> (i32, i32, i32) {
    %c0_i32 = arith.constant 0 : i32
    %c0_i32_0 = arith.constant 0 : i32
    %c0_i32_1 = arith.constant 0 : i32
    %c0_i32_2 = arith.constant 0 : i32
    return %c0_i32, %c0_i32_0, %c0_i32_1 : i32, i32, i32
  }
  func.func @transform_5(%arg0: i32) -> (i32, i32) {
    %c0_i32 = arith.constant 0 : i32
    %c0_i32_0 = arith.constant 0 : i32
    %c0_i32_1 = arith.constant 0 : i32
    return %c0_i32, %c0_i32_0 : i32, i32
  }
  func.func @transform_6(%arg0: i32) -> (i32, i32) {
    %c0_i32 = arith.constant 0 : i32
    %c0_i32_0 = arith.constant 0 : i32
    %c0_i32_1 = arith.constant 0 : i32
    return %c0_i32, %c0_i32_0 : i32, i32
  }
  func.func @transform_7(%arg0: i32) -> (i32, i32) {
    %c0_i32 = arith.constant 0 : i32
    %c0_i32_0 = arith.constant 0 : i32
    %c0_i32_1 = arith.constant 0 : i32
    return %c0_i32, %c0_i32_0 : i32, i32
  }
  func.func @transform_8(%arg0: i32) -> (i32, i32) {
    %c0_i32 = arith.constant 0 : i32
    %c0_i32_0 = arith.constant 0 : i32
    %c0_i32_1 = arith.constant 0 : i32
    return %c0_i32, %c0_i32_0 : i32, i32
  }
  func.func @transform_9(%arg0: i32) -> (i32, i32) {
    %c0_i32 = arith.constant 0 : i32
    %c0_i32_0 = arith.constant 0 : i32
    %c0_i32_1 = arith.constant 0 : i32
    return %c0_i32, %c0_i32_0 : i32, i32
  }
  func.func @transform_10(%arg0: i32) -> (i32, i32) {
    %c0_i32 = arith.constant 0 : i32
    %c0_i32_0 = arith.constant 0 : i32
    %c0_i32_1 = arith.constant 0 : i32
    return %c0_i32, %c0_i32_0 : i32, i32
  }
  func.func @transform_11(%arg0: i32) -> (i32, i32) {
    %c0_i32 = arith.constant 0 : i32
    %c0_i32_0 = arith.constant 0 : i32
    %c0_i32_1 = arith.constant 0 : i32
    return %c0_i32, %c0_i32_0 : i32, i32
  }
  func.func @transform_12(%arg0: i32) -> (i32, i32) {
    %c0_i32 = arith.constant 0 : i32
    %c0_i32_0 = arith.constant 0 : i32
    %c0_i32_1 = arith.constant 0 : i32
    return %c0_i32, %c0_i32_0 : i32, i32
  }
  func.func @transform_13(%arg0: i32) -> (i32, i32, i32) {
    %c0_i32 = arith.constant 0 : i32
    %c0_i32_0 = arith.constant 0 : i32
    %c0_i32_1 = arith.constant 0 : i32
    return %arg0, %c0_i32, %c0_i32_0 : i32, i32, i32
  }
}

</mosaic_0001>

<bundles_post_ra>
// kernel: tpu_custom_call.1
= control target key start
LH: loop header
LB: loop body
LE: loop exit
PB: predicated region body
PF: predicated region fallthrough
CT: control target
= control target key end

     0   :  { %s3953_s0 = inlined_call_operand.hbm [shape: f32[2,8,32], index: 0, kind: input, shape index: {}]   ;;  %s3954_s1 = inlined_call_operand.vmem [shape: f32[32,96], index: 1, kind: input, shape index: {}]   ;;  %s3955_s2 = inlined_call_operand.vmem [shape: f32[4,8,32], index: 2, kind: input, shape index: {}]   ;;  %s3956_s3 = inlined_call_operand.vmem [shape: f32[4,15,8], index: 3, kind: input, shape index: {}]   ;;  %s3957_s4 = inlined_call_operand.vmem [shape: f32[8,8,15], index: 4, kind: input, shape index: {}]   ;;  %s3958_s5 = inlined_call_operand.vmem [shape: f32[32,64], index: 5, kind: input, shape index: {}]   ;;  %s3959_s6 = inlined_call_operand.vmem [shape: f32[1,64], index: 6, kind: input, shape index: {}]   ;;  %s3960_s7 = inlined_call_operand.vmem [shape: f32[64,32], index: 7, kind: input, shape index: {}]   ;;  %s3961_s8 = inlined_call_operand.vmem [shape: f32[1,32], index: 8, kind: input, shape index: {}]   ;;  %s3962_s9 = inlined_call_operand.vmem [shape: f32[1,32], index: 9, kind: input, shape index: {}]   ;;  %s3963_s10 = inlined_call_operand.vmem [shape: f32[1,32], index: 10, kind: input, shape index: {}]   ;;  %s3964_s11 = inlined_call_operand.vmem [shape: f32[1,32], index: 11, kind: input, shape index: {}]   ;;  %s3965_s12 = inlined_call_operand.vmem [shape: f32[1,32], index: 12, kind: input, shape index: {}]   ;;  %s3966_s13 = inlined_call_operand.hbm [shape: f32[2,8,32], index: 13, kind: output, shape index: {}]  }
   0x1   :  { %3975 = sst [smem:[#allocation13_spill]] %s3966_s13 }
   0x2   :  { %18 = vsyncpa [#allocation3], 0 }
   0x3   :  { %20 = vsyncpa [#allocation3 + $0x1], 0 }
   0x4   :  { %21 = vsyncpa [#allocation4], 0 }
   0x5   :  { %23 = vsyncpa [#allocation4 + $0x1], 0  ;;  %s3309_s25 = smov 0   ;;  %s3311_s26 = smov 0  }
   0x6   :  { %s3313_s27 = smov 0   ;;  %s3315_s28 = smov 0  }
   0x7 LB: > { %3976 = sst [smem:[#allocation8_spill]] %s3215_s25  ;;  %s3330_s29 = sadd.s32 4294967295, %s3227_s28   ;;  %s3227_s28 = sphi %s3315_s28, %s3995_s28   ;;  %s3223_s27 = sphi %s3313_s27, %s3997_s27   ;;  %s3219_s26 = sphi %s3311_s26, %s3999_s26   ;;  %s3215_s25 = sphi %s3309_s25, %s3998_s25  }
   0x8   : > { %3977 = sst [smem:[#allocation9_spill]] %s3223_s27  ;;  %s2828_s30 = sadd.s32 4294967294, %s3227_s28  }
   0x9   : > { %s3334_s14 = sadd.s32 1, %s3227_s28   ;;  %s36_s15 = sadd.s32 1, %s3223_s27 }
   0xa   : > { %3978 = sst [smem:[#allocation10_spill]] %s3334_s14  ;;  %s33_s16 = ssub.s32 %s3227_s28, %s3334_s14 }
   0xb   : > { %p43_p0 = scmp.ne.s32.totalorder %s3223_s27, %s3219_s26  ;;  %p34_p1 = scmp.eq.s32.totalorder %s33_s16, 0 }
   0xc   : > { %p44_p2 = scmp.eq.s32.totalorder %s3227_s28, 0  ;;  %p49_p3 = scmp.ne.s32.totalorder %s3219_s26, %s3215_s25 }
   0xd   : > { %p50_p4 = scmp.eq.s32.totalorder %s3330_s29, 0  ;;  %p325_p7 = scmp.eq.s32.totalorder %s3330_s29, 1 }
   0xe   : > { %s3346_s17 = scalar_select %p34_p1, %s3223_s27, %s36_s15  }
   0xf   : > { %p3348_p5 = por %p44_p2, %p43_p0  ;;  %p3352_p6 = por %p50_p4, %p49_p3 }
  0x10   : > { %3979 = sst [smem:[#allocation11_spill]] %s3346_s17  ;;  %p331_p8 = scmp.eq.s32.totalorder %s2828_s30, 1 }
  0x11   : > { %s3981_s19 = scalar_select %p3352_p6, 1, 0 }
  0x12   : > { %p3073_p10 = scmp.lt.s32.totalorder %s3227_s28, 2  ;;  %p3359_p11 = por %p325_p7, %p43_p0 }
  0x13   : > { %p3363_p12 = por %p331_p8, %p49_p3  ;;  %s387_s22 = sand.u32 1, %s3223_s27  }
  0x14   : > { %s3982_s20 = scalar_select %p3359_p11, 1, 0 }
  0x15   : > { %s3983_s21 = scalar_select %p3363_p12, 1, 0 }
  0x16   : > { %s2832_s23 = sshll.u32 %s3227_s28, 7  ;;  %s2831_s24 = sshll.u32 %s387_s22, 3 }
  0x17   : > { %3984 = sst [smem:[#allocation12_spill]] %s3983_s21  ;;  %s3372_s17 = scalar_lea.hbm %s3953_s0, %s2832_s23 }
  0x18   : > { %s391_s30 = scalar_lea.vmem [#allocation2], %s2831_s24  ;;  %p3376_p13 = pnand %p3073_p10, %p3348_p5 }
  0x19   : > { %s398_s14 = sshll.u32 %s391_s30, 4  ;;  %s388_s27 = scalar_lea.sflag [#allocation3], %s387_s22  ;;  %s3380_s14 = int_to_ptr.vmem [resolvable:$true] %s398_s14 }
  0x1a   : > { %s3135_s21 = scalar_lea.hbm %s3372_s17, 128  ;;  %p3137_p3 = pneg %p3376_p13 }
  0x1b   : > { %p3136_p2 = scmp.ne.s32.totalorder %s3372_s17, %s3135_s21  ;;  %s3140_s18 = scalar_lea.hbm %s3953_s0, 256 }
  0x1c   : > { %p3141_p5 = scmp.lt.s32.totalorder %s3372_s17, %s3953_s0  ;;  %p3142_p8 = scmp.lt.s32.totalorder %s3140_s18, %s3135_s21 }
  0x1d   : > { %p3138_p4 = pnand %p3137_p3, %p3136_p2 }
  0x1e   : > { %p3143_p10 = por %p3142_p8, %p3141_p5 }
  0x1f   : > { %p3139_p7 = pneg %p3138_p4 }
  0x21   : > { %p3144_p9 = pnand %p3143_p10, %p3139_p7 }
  0x23   : > { %3147 = shalt.err (!%p3144_p9)
}
  0x24   : > { %s3148_s22 = scalar_lea.vmem %s3380_s14, 128  ;;  %s3229_s30 = smov [#allocation2]  }
  0x25   : > { %p3149_p0 = scmp.ne.s32.totalorder %s3380_s14, %s3148_s22  ;;  %s3153_s13 = sshll.u32 %s3229_s30, 4  ;;  %s3154_s13 = int_to_ptr.vmem [resolvable:$false] %s3153_s13 }
  0x26   : > { %s3155_s23 = scalar_lea.vmem %s3154_s13, 256  ;;  %p3156_p4 = scmp.lt.s32.totalorder %s3380_s14, %s3154_s13 }
  0x27   : > { %p3151_p1 = pnand %p3149_p0, %p3137_p3  ;;  %p3157_p12 = scmp.lt.s32.totalorder %s3155_s23, %s3148_s22 }
  0x29   : > { %p3152_p2 = pneg %p3151_p1  ;;  %p3158_p11 = por %p3157_p12, %p3156_p4 }
  0x2b   : > { %p3159_p6 = pnand %p3158_p11, %p3152_p2 }
  0x2d   : > { %3162 = shalt.err (!%p3159_p6)
}
  0x2e   : > { %3068 = dma.hbm_to_vmem [thread:$0]  (!%p3376_p13), %s3372_s17, 128, %s3380_s14, %s388_s27  }
  0x2f   : > { %p3986_p9 = scmp.lt.s32.totalorder %s3227_s28, 3  ;;  %p3987_p7 = scmp.ge.s32.totalorder %s3227_s28, 1 }
  0x31   : > { %p404_p0 = pnand %p3987_p7, %p3986_p9 }
  0x32   : > { %s3407_s21 = sand.u32 (!%p404_p0), 1, %s3219_s26   ;;  %p3988_p6 = scmp.ne.s32.totalorder (!%p404_p0), %s3981_s19, 0 }
  0x33   : > { %407 = sbr.rel (%p404_p0) target bundleno = 2496 (0x9c0), region = 72  ;;  %s2834_s13 = sshll.u32 (!%p404_p0), %s3407_s21, 3 }
  0x34   : > { %s410_s24 = scalar_lea.sflag (!%p404_p0), [#allocation3], %s3407_s21  ;;  %s413_s25 = scalar_lea.vmem (!%p404_p0), [#allocation2], %s2834_s13 }
  0x38   : > { %3206 = dma.done.wait (%p3988_p6), %s410_s24, 128  }
  0x39   : > { %3208 = vsyncadd (%p3988_p6), %s410_s24, 4294967168  ;;  %v3230_v0 = vmov 0.0   ;;  %vm3231_vm0 = vmmov 0   ;;  %vm550_vm1 = vcmask 64512   ;;  %v460_v1 = vld [vmem:[%s3954_s1 + $0x18] sm:$0xff]  ;;  %v459_v2 = vld [vmem:[%s3954_s1 + $0x10] sm:$0xff]  ;;  %v871_v14 = vlaneseq }
  0x3a   : > { %2932 = vmatprep.subr.mxu0 %v3230_v0  ;;  %2940 = vmatprep.mubr.msk.f32.mxu0 %vm3231_vm0, %v3230_v0  ;;  %v543_v3 = vld [vmem:[%s3956_s3 + $0x8] sm:$0x7f]  ;;  %v542_v5 = vld [vmem:[%s3956_s3] sm:$0xff]  ;;  %vm461_vm2 = vcmask 261120   ;;  %v545_v8 = vld [vmem:[%s3956_s3 + $0x18] sm:$0x7f] }
  0x3b   : > { %2943 = vmatprep.subr.mxu1 %v3230_v0  ;;  %2947 = vmatprep.mubr.msk.f32.mxu1 %vm3231_vm0, %v3230_v0  ;;  %v458_v4 = vld [vmem:[%s3954_s1 + $0x8] sm:$0xff]  ;;  %v457_v6 = vld [vmem:[%s3954_s1] sm:$0xff]  ;;  %v544_v9 = vld [vmem:[%s3956_s3 + $0x10] sm:$0xff]  ;;  %s3232_s16 = smov 104   ;;  %s3233_s22 = smov 120   ;;  %v872_v15 = vshrl.u32 %v871_v14, 7 }
  0x3c   : > { %2933 = vmatpush3.msra.mxu0 %v460_v1  ;;  %2944 = vmatpush3.xpose.msk.msra.mxu1 %vm550_vm1, %v543_v3  ;;  %v3445_v7 = vld [vmem:[%s413_s25] sm:$0xff]  ;;  %s3234_s24 = smov 96   ;;  %s3235_s27 = smov 112   ;;  %v1371_v16 = vand.u32 127, %v871_v14  ;;  %v549_v18 = vld [vmem:[%s3956_s3 + $0x38] sm:$0x7f] }
  0x3d   : > { %2934 = vmatprep.subr.mxu0 %v3230_v0  ;;  %2945 = vmatprep.subr.mxu1 %v3230_v0  ;;  %v547_v11 = vld [vmem:[%s3956_s3 + $0x28] sm:$0x7f]  ;;  %v546_v13 = vld [vmem:[%s3956_s3 + $0x20] sm:$0xff]  ;;  %v548_v21 = vld [vmem:[%s3956_s3 + $0x30] sm:$0xff]  ;;  %v3236_v24 = vmov 1966171168  }
  0x3e   : > { %2935 = vmatpush3.msra.mxu0 %v459_v2  ;;  %v3485_v17 = vsub.s32 %v1371_v16, %v872_v15  ;;  %v869_v25 = vunpack.c.l.s4 %v3236_v24  ;;  %v3527_v31 = vsub.s32 0, %v872_v15  ;;  %v3535_v39 = vld [vmem:[%s3957_s4] sm:$0xff]  ;;  %vm1263_vm3 = vcmask 121856   ;;  %v3542_v42 = vld [vmem:[%s3957_s4 + $0x8] sm:$0xff]  ;;  %v3551_v48 = vld [vmem:[%s3957_s4 + $0x18] sm:$0xff]  ;;  %s3237_s30 = smov 64  }
  0x3f   : > { %2936 = vmatprep.subr.mxu0 %v3230_v0  ;;  %v3556_v49 = vld [vmem:[%s3957_s4 + $0x10] sm:$0xff]  ;;  %v3568_v58 = vld [vmem:[%s3957_s4 + $0x38] sm:$0xff]  ;;  %v3574_v60 = vld [vmem:[%s3957_s4 + $0x20] sm:$0xff]  ;;  %vm1404_vm4 = vcmask 1041409   ;;  %vm1406_vm5 = vcmask 1042434   ;;  %vm1408_vm6 = vcmask 1043459  }
  0x40   : > { %2937 = vmatpush3.msra.mxu0 %v458_v4  ;;  %2946 = vmatpush3.xpose.msk.msra.mxu1 %vm550_vm1, %v542_v5  ;;  %v870_v26 = vunpack.c.0.s8 %v869_v25  ;;  %v3584_v4 = vld [vmem:[%s3957_s4 + $0x28] sm:$0xff]  ;;  %vm1410_vm7 = vcmask 1044484   ;;  %vm1412_vm8 = vcmask 1045509   ;;  %vm1414_vm9 = vcmask 1046534   ;;  %s2874_s15 = sshll.u32 %s3330_s29, 7  ;;  %s2745_s14 = scalar_lea.sflag [#allocation4], %s3407_s21 }
  0x41   : > { %2938 = vmatprep.subr.mxu0 %v3230_v0  ;;  %2957 = vmatprep.subr.mxu1 %v3230_v0  ;;  %vm1416_vm10 = vcmask 1047559   ;;  %vm2639_vm11 = vcmask 523264   ;;  %p3990_p12 = scmp.ne.s32.totalorder %s3982_s20, 0  ;;  %s3238_s25 = smov [#allocation5]  }
  0x42   : > { %2939 = vmatpush3.msra.mxu0 %v457_v6  ;;  %v3524_v27 = vsub.s32 %v870_v26, %v872_v15  ;;  %s3167_s29 = sshll.u32 %s3238_s25, 4  ;;  %s3168_s29 = int_to_ptr.vmem [resolvable:$false] %s3167_s29 }
  0x43   : > { %2941 = vmatmul.mubr.msk.f32.vlgmr.msra.gmra.mxu0 %vm461_vm2, %v3445_v7  ;;  %2950 = vmatprep.subr.mxu0 %v3230_v0 }
  0x44   : > { %2954 = vmatprep.mubr.msk.f32.mxu0 %vm3231_vm0, %v3230_v0  ;;  %2951 = vmatpush3.xpose.msk.msra.mxu0 %vm550_vm1, %v545_v8 }
  0x45   : > { %2952 = vmatprep.subr.mxu0 %v3230_v0 }
  0x48   : > { %2953 = vmatpush3.xpose.msk.msra.mxu0 %vm550_vm1, %v544_v9 }
  0x49   : > { %2964 = vmatprep.subr.mxu0 %v3230_v0 }
 0x103   : > { %v3465_v10 = vpop.f32.mrf.mxu0 }
 0x104   : > { %540 = vrot.lane.b32.xlu1 %v3465_v10, %s3232_s16  ;;  %536 = vrot.lane.b32.xlu0 %v3465_v10, %s3233_s22  ;;  %s455_s16 = scalar_lea.vmem [#allocation5], %s2834_s13  ;;  %s3169_s13 = scalar_lea.vmem %s3168_s29, 256 }
 0x105   : > { %2948 = vmatmul.mubr.msk.f32.vlgmr.msra.gmra.mxu1 %vm550_vm1, %v3465_v10  ;;  %v2942_v12 = vpop.f32.mrf.mxu0  ;;  %s2758_s22 = sshll.u32 %s455_s16, 4  ;;  %s2759_s22 = int_to_ptr.vmem [resolvable:$true] %s2758_s22 }
 0x106   : > { %2958 = vmatpush3.xpose.msk.msra.mxu1 %vm550_vm1, %v547_v11  ;;  %2961 = vmatprep.mubr.msk.f32.mxu1 %vm3231_vm0, %v3230_v0  ;;  %v3593_v11 = vld [vmem:[%s3957_s4 + $0x30] sm:$0xff]  ;;  %s3163_s17 = scalar_lea.vmem %s2759_s22, 128  ;;  %p3170_p3 = scmp.lt.s32.totalorder %s2759_s22, %s3168_s29 }
 0x107   : > { %2959 = vmatprep.subr.mxu1 %v3230_v0  ;;  %p3164_p11 = scmp.ne.s32.totalorder %s2759_s22, %s3163_s17  ;;  %p3171_p5 = scmp.lt.s32.totalorder %s3169_s13, %s3163_s17 }
 0x108   : > { %1360 = vrot.lane.b32.xlu1 %v3465_v10, %s3234_s24  ;;  %538 = vrot.lane.b32.xlu0 %v3465_v10, %s3235_s27 }
 0x109   : > { %p3165_p13 = pnand %p3164_p11, %p3990_p12  ;;  %p3172_p8 = por %p3171_p5, %p3170_p3 }
 0x10a   : > { %2960 = vmatpush3.xpose.msk.msra.mxu1 %vm550_vm1, %v546_v13 }
 0x10b   : > { %2976 = vmatprep.subr.mxu1 %v3230_v0  ;;  %p3166_p1 = pneg %p3165_p13 }
 0x10d   : > { %p3173_p10 = pnand %p3172_p8, %p3166_p1 }
 0x176   : > { %v3490_v19 = vpop.permute.xlu0 %536  ;;  %v3498_v20 = vpop.permute.xlu1 %540 }
 0x177   : > { %2955 = vmatmul.mubr.msk.f32.vlgmr.msra.gmra.mxu0 %vm550_vm1, %v3490_v19  ;;  %1491 = vrot.lane.b32.xlu0 %v3490_v19, %s3234_s24 }
 0x178   : > { %2965 = vmatpush3.xpose.msk.msra.mxu0 %vm550_vm1, %v549_v18  ;;  %2968 = vmatprep.mubr.msk.f32.mxu0 %vm3231_vm0, %v3230_v0 }
 0x179   : > { %2966 = vmatprep.subr.mxu0 %v3230_v0 }
 0x17a   : > { %v3504_v22 = vpop.permute.xlu0 %538  ;;  %v1361_v23 = vpop.permute.xlu1 %1360 }
 0x17b   : > { %1735 = vrot.lane.b32.xlu0 %v3498_v20, %s3234_s24  ;;  %1613 = vrot.lane.b32.xlu1 %v3504_v22, %s3234_s24  ;;  %s3989_s24 = sld [smem:[#allocation13_spill]] }
 0x17c   : > { %2967 = vmatpush3.xpose.msk.msra.mxu0 %vm550_vm1, %v548_v21  ;;  %2962 = vmatmul.mubr.msk.f32.vlgmr.msra.gmra.mxu1 %vm550_vm1, %v3504_v22 }
 0x17d   : > { %2971 = vmatprep.subr.mxu0 %v3230_v0  ;;  %2978 = vmatprep.mubr.msk.f32.mxu1 %vm3231_vm0, %v3230_v0 }
 0x17f   : > { %2969 = vmatmul.mubr.msk.f32.vlgmr.msra.gmra.mxu0 %vm550_vm1, %v3498_v20 }
 0x180   : > { %2972 = vmatpush3.xpose.msk.msra.mxu0 %vm550_vm1, %v1361_v23  ;;  %2973 = vmatprep.mubr.msk.f32.mxu0 %vm3231_vm0, %v3230_v0 }
 0x181   : > { %2981 = vmatprep.subr.mxu0 %v3230_v0  ;;  %s2756_s27 = scalar_lea.hbm %s3989_s24, %s2874_s15 }
 0x183   : > { %2974 = vmatmul.mubr.msk.f32.vlgmr.msra.gmra.mxu0 %vm550_vm1, %v3465_v10 }
 0x184   : > { %2983 = vmatprep.mubr.msk.f32.mxu0 %vm3231_vm0, %v3230_v0 }
 0x1c5   : > { %v625_v28 = vpop.f32.mrf.mxu1 }
 0x1c6   : > { %v867_v29 = vcombine.high %v625_v28, %v625_v28  ;;  %v874_v30 = vrot.slane %v625_v28, %v3524_v27 }
 0x1c7   : > { %v2949_v32 = vpop.f32.mrf.mxu1 }
 0x1c8   : > { %v881_v33 = vrot.slane %v867_v29, %v3524_v27  ;;  %v882_v34 = vcombine.high %v874_v30, %v874_v30  ;;  %v890_v35 = vrot.slane %v874_v30, %v3524_v27 }
 0x1ca   : > { %v883_v36 = vcombine.high %v881_v33, %v881_v33  ;;  %v904_v37 = vrot.slane %v882_v34, %v3524_v27  ;;  %v912_v38 = vcombine.high %v890_v35, %v890_v35  ;;  %v897_v40 = vrot.slane %v881_v33, %v3524_v27 }
 0x1cb   : > { %v1074_v41 = vrot.slane %v890_v35, %v3527_v31 }
 0x1cc   : > { %v911_v43 = vrot.slane %v883_v36, %v3524_v27  ;;  %v1078_v44 = vrot.slane %v904_v37, %v3527_v31  ;;  %v914_v45 = vcombine.high %v904_v37, %v904_v37  ;;  %v1082_v46 = vrot.slane %v912_v38, %v3527_v31 }
 0x1cd   : > { %v1231_v47 = vmul.f32 %v1074_v41, %v3535_v39  ;;  %v1090_v54 = vrot.slane %v897_v40, %v3527_v31  ;;  %v913_v3 = vcombine.high %v897_v40, %v897_v40 }
 0x1ce   : > { %v1232_v50 = vmul.f32 %v1078_v44, %v3542_v42  ;;  %v1086_v51 = vrot.slane %v914_v45, %v3527_v31  ;;  %v915_v52 = vcombine.high %v911_v43, %v911_v43  ;;  %v1233_v57 = vmul.f32 %v1082_v46, %v3556_v49 }
 0x1cf   : > { %v1264_v53 = vsel %vm1263_vm3, %v1231_v47, 0.0  ;;  %v1235_v1 = vmul.f32 %v1090_v54, %v3574_v60  ;;  %v1094_v2 = vrot.slane %v911_v43, %v3527_v31  ;;  %v1098_v9 = vrot.slane %v913_v3, %v3527_v31 }
 0x1d0   : > { %1265 = vadd.xlane.f32.xlu1 %v1264_v53  ;;  %v1267_v55 = vsel %vm1263_vm3, %v1232_v50, 0.0  ;;  %v1234_v56 = vmul.f32 %v1086_v51, %v3551_v48  ;;  %v1102_v59 = vrot.slane %v915_v52, %v3527_v31  ;;  %v1270_v63 = vsel %vm1263_vm3, %v1233_v57, 0.0 }
 0x1d1   : > { %1268 = vadd.xlane.f32.xlu0 %v1267_v55  ;;  %v1276_v6 = vsel %vm1263_vm3, %v1235_v1, 0.0  ;;  %v1236_v8 = vmul.f32 %v1094_v2, %v3584_v4  ;;  %v1237_v13 = vmul.f32 %v1098_v9, %v3593_v11 }
 0x1d2   : > { %v1273_v61 = vsel %vm1263_vm3, %v1234_v56, 0.0  ;;  %v1238_v62 = vmul.f32 %v1102_v59, %v3568_v58 }
 0x1d3   : > { %v1279_v12 = vsel %vm1263_vm3, %v1236_v8, 0.0  ;;  %v1282_v14 = vsel %vm1263_vm3, %v1237_v13, 0.0 }
 0x1d4   : > { %1274 = vadd.xlane.f32.xlu1 %v1273_v61  ;;  %v1285_v5 = vsel %vm1263_vm3, %v1238_v62, 0.0 }
 0x1d5   : > { %1271 = vadd.xlane.f32.xlu0 %v1270_v63 }
 0x1d8   : > { %1286 = vadd.xlane.f32.xlu1 %v1285_v5 }
 0x1d9   : > { %1277 = vadd.xlane.f32.xlu0 %v1276_v6 }
 0x1dd   : > { %1280 = vadd.xlane.f32.xlu0 %v1279_v12 }
 0x1e1   : > { %1283 = vadd.xlane.f32.xlu0 %v1282_v14 }
 0x1e9   : > { %v1492_v15 = vpop.permute.xlu0 %1491 }
 0x1ea   : > { %2977 = vmatpush3.xpose.msk.msra.mxu1 %vm550_vm1, %v1492_v15 }
 0x1eb   : > { %2986 = vmatprep.subr.mxu1 %v3230_v0 }
 0x1ed   : > { %v1614_v16 = vpop.permute.xlu1 %1613  ;;  %v1736_v18 = vpop.permute.xlu0 %1735  ;;  %2979 = vmatmul.mubr.msk.f32.vlgmr.msra.gmra.mxu1 %vm550_vm1, %v3490_v19 }
 0x1ee   : > { %2982 = vmatpush3.xpose.msk.msra.mxu0 %vm550_vm1, %v1614_v16  ;;  %2987 = vmatpush3.xpose.msk.msra.mxu1 %vm550_vm1, %v1736_v18 }
 0x1ef   : > { %2988 = vmatprep.mubr.msk.f32.mxu1 %vm3231_vm0, %v3230_v0  ;;  %2991 = vmatprep.subr.mxu0 %v3230_v0 }
 0x1f0   : > { %2996 = vmatprep.subr.mxu1 %v3230_v0 }
 0x1f1   : > { %2984 = vmatmul.mubr.msk.f32.vlgmr.msra.gmra.mxu0 %vm550_vm1, %v3504_v22  ;;  %2989 = vmatmul.mubr.msk.f32.vlgmr.msra.gmra.mxu1 %vm550_vm1, %v3498_v20 }
 0x1f2   : > { %2993 = vmatprep.mubr.msk.f32.mxu0 %vm3231_vm0, %v3230_v0  ;;  %2998 = vmatprep.mubr.msk.f32.mxu1 %vm3231_vm0, %v3230_v0 }
 0x237   : > { %v703_v21 = vpop.f32.mrf.mxu0 }
 0x238   : > { %v916_v23 = vcombine.high %v703_v21, %v703_v21  ;;  %v923_v24 = vrot.slane %v703_v21, %v3524_v27 }
 0x239   : > { %v2956_v25 = vpop.f32.mrf.mxu0 }
 0x23a   : > { %v931_v26 = vcombine.high %v923_v24, %v923_v24  ;;  %v939_v28 = vrot.slane %v923_v24, %v3524_v27  ;;  %v930_v29 = vrot.slane %v916_v23, %v3524_v27 }
 0x23c   : > { %v953_v30 = vrot.slane %v931_v26, %v3524_v27  ;;  %v961_v32 = vcombine.high %v939_v28, %v939_v28  ;;  %v781_v33 = vpop.f32.mrf.mxu1  ;;  %v1106_v35 = vrot.slane %v939_v28, %v3527_v31  ;;  %v932_v41 = vcombine.high %v930_v29, %v930_v29 }
 0x23d   : > { %v972_v34 = vrot.slane %v781_v33, %v3524_v27  ;;  %v965_v36 = vcombine.high %v781_v33, %v781_v33  ;;  %v946_v50 = vrot.slane %v930_v29, %v3524_v27 }
 0x23e   : > { %v2963_v37 = vpop.f32.mrf.mxu1  ;;  %v1110_v38 = vrot.slane %v953_v30, %v3527_v31  ;;  %v1114_v40 = vrot.slane %v961_v32, %v3527_v31  ;;  %v1239_v46 = vmul.f32 %v1106_v35, %v3535_v39  ;;  %v960_v63 = vrot.slane %v932_v41, %v3524_v27 }
 0x23f   : > { %v980_v43 = vcombine.high %v972_v34, %v972_v34  ;;  %v988_v44 = vrot.slane %v972_v34, %v3524_v27  ;;  %v3625_v45 = vpop.f32.mrf.mxu0  ;;  %v979_v54 = vrot.slane %v965_v36, %v3524_v27  ;;  %v1122_v5 = vrot.slane %v946_v50, %v3527_v31 }
 0x240   : > { %v1240_v47 = vmul.f32 %v1110_v38, %v3542_v42  ;;  %v1288_v55 = vsel %vm1263_vm3, %v1239_v46, 0.0  ;;  %v1241_v56 = vmul.f32 %v1114_v40, %v3556_v49  ;;  %v1126_v15 = vrot.slane %v960_v63, %v3527_v31 }
 0x241   : > { %v1002_v51 = vrot.slane %v980_v43, %v3524_v27  ;;  %v1010_v52 = vcombine.high %v988_v44, %v988_v44  ;;  %v2970_v53 = vpop.f32.mrf.mxu0  ;;  %1289 = vadd.xlane.f32.xlu0 %v1288_v55  ;;  %v1138_v61 = vrot.slane %v988_v44, %v3527_v31  ;;  %v981_v6 = vcombine.high %v979_v54, %v979_v54 }
 0x242   : > { %v1291_v59 = vsel %vm1263_vm3, %v1240_v47, 0.0  ;;  %v995_v8 = vrot.slane %v979_v54, %v3524_v27  ;;  %v1294_v9 = vsel %vm1263_vm3, %v1241_v56, 0.0  ;;  %v962_v16 = vcombine.high %v946_v50, %v946_v50 }
 0x243   : > { %v3634_v57 = vpop.f32.mrf.mxu0  ;;  %v1146_v62 = vrot.slane %v1010_v52, %v3527_v31  ;;  %1292 = vadd.xlane.f32.xlu1 %v1291_v59  ;;  %v1247_v2 = vmul.f32 %v1138_v61, %v3535_v39  ;;  %v1142_v3 = vrot.slane %v1002_v51, %v3527_v31  ;;  %v1243_v21 = vmul.f32 %v1122_v5, %v3574_v60 }
 0x244   : > { %v1154_v23 = vrot.slane %v995_v8, %v3527_v31  ;;  %v1009_v24 = vrot.slane %v981_v6, %v3524_v27  ;;  %v1244_v26 = vmul.f32 %v1126_v15, %v3584_v4  ;;  %v1130_v28 = vrot.slane %v962_v16, %v3527_v31 }
 0x245   : > { %v2975_v1 = vpop.f32.mrf.mxu0  ;;  %v1249_v12 = vmul.f32 %v1146_v62, %v3556_v49  ;;  %v1312_v13 = vsel %vm1263_vm3, %v1247_v2, 0.0  ;;  %v1248_v14 = vmul.f32 %v1142_v3, %v3542_v42  ;;  %v963_v29 = vcombine.high %v953_v30, %v953_v30 }
 0x246   : > { %1313 = vadd.xlane.f32.xlu0 %v1312_v13  ;;  %v1021_v32 = vrot.slane %v3625_v45, %v3524_v27  ;;  %v1300_v33 = vsel %vm1263_vm3, %v1243_v21, 0.0  ;;  %v1251_v34 = vmul.f32 %v1154_v23, %v3574_v60  ;;  %v1158_v35 = vrot.slane %v1009_v24, %v3527_v31 }
 0x247   : > { %1295 = vadd.xlane.f32.xlu1 %v1294_v9  ;;  %v1318_v18 = vsel %vm1263_vm3, %v1249_v12, 0.0  ;;  %v1315_v25 = vsel %vm1263_vm3, %v1248_v14, 0.0  ;;  %v1011_v36 = vcombine.high %v995_v8, %v995_v8  ;;  %v1303_v37 = vsel %vm1263_vm3, %v1244_v26, 0.0 }
 0x248   : > { %v1245_v38 = vmul.f32 %v1130_v28, %v3593_v11  ;;  %v1118_v40 = vrot.slane %v963_v29, %v3527_v31  ;;  %v1012_v41 = vcombine.high %v1002_v51, %v1002_v51  ;;  %v1014_v30 = vcombine.high %v3625_v45, %v3625_v45 }
 0x249   : > { %v1029_v43 = vcombine.high %v1021_v32, %v1021_v32  ;;  %v1324_v44 = vsel %vm1263_vm3, %v1251_v34, 0.0  ;;  %v1252_v46 = vmul.f32 %v1158_v35, %v3584_v4  ;;  %v1162_v47 = vrot.slane %v1011_v36, %v3527_v31 }
 0x24a   : > { %1319 = vadd.xlane.f32.xlu0 %v1318_v18  ;;  %v1013_v50 = vcombine.high %v1009_v24, %v1009_v24  ;;  %v1306_v52 = vsel %vm1263_vm3, %v1245_v38, 0.0  ;;  %v1242_v53 = vmul.f32 %v1118_v40, %v3551_v48  ;;  %v1150_v54 = vrot.slane %v1012_v41, %v3527_v31 }
 0x24b   : > { %1316 = vadd.xlane.f32.xlu1 %v1315_v25  ;;  %v964_v51 = vcombine.high %v960_v63, %v960_v63  ;;  %v1037_v55 = vrot.slane %v1021_v32, %v3524_v27  ;;  %v1028_v45 = vrot.slane %v1014_v30, %v3524_v27  ;;  %v1051_v56 = vrot.slane %v1029_v43, %v3524_v27 }
 0x24c   : > { %v1327_v59 = vsel %vm1263_vm3, %v1252_v46, 0.0  ;;  %v1253_v61 = vmul.f32 %v1162_v47, %v3593_v11  ;;  %v1297_v62 = vsel %vm1263_vm3, %v1242_v53, 0.0  ;;  %v1250_v1 = vmul.f32 %v1150_v54, %v3551_v48 }
 0x24d   : > { %v1166_v2 = vrot.slane %v1013_v50, %v3527_v31  ;;  %v1134_v63 = vrot.slane %v964_v51, %v3527_v31  ;;  %v1059_v3 = vcombine.high %v1037_v55, %v1037_v55  ;;  %v1044_v5 = vrot.slane %v1028_v45, %v3524_v27 }
 0x24e   : > { %1304 = vadd.xlane.f32.xlu0 %v1303_v37  ;;  %v1170_v8 = vrot.slane %v1037_v55, %v3527_v31  ;;  %v1174_v9 = vrot.slane %v1051_v56, %v3527_v31  ;;  %v1330_v12 = vsel %vm1263_vm3, %v1253_v61, 0.0  ;;  %v1321_v13 = vsel %vm1263_vm3, %v1250_v1, 0.0 }
 0x24f   : > { %1301 = vadd.xlane.f32.xlu1 %v1300_v33  ;;  %v1254_v14 = vmul.f32 %v1166_v2, %v3568_v58  ;;  %v1246_v15 = vmul.f32 %v1134_v63, %v3568_v58  ;;  %v1178_v18 = vrot.slane %v1059_v3, %v3527_v31  ;;  %v1030_v21 = vcombine.high %v1028_v45, %v1028_v45 }
 0x250   : > { %v1255_v24 = vmul.f32 %v1170_v8, %v3535_v39  ;;  %v1256_v25 = vmul.f32 %v1174_v9, %v3542_v42  ;;  %v1186_v26 = vrot.slane %v1044_v5, %v3527_v31  ;;  %v1060_v32 = vcombine.high %v1044_v5, %v1044_v5 }
 0x251   : > { %v1333_v28 = vsel %vm1263_vm3, %v1254_v14, 0.0  ;;  %v1309_v29 = vsel %vm1263_vm3, %v1246_v15, 0.0  ;;  %v1061_v33 = vcombine.high %v1051_v56, %v1051_v56  ;;  %v1257_v34 = vmul.f32 %v1178_v18, %v3556_v49 }
 0x252   : > { %1307 = vadd.xlane.f32.xlu0 %v1306_v52  ;;  %v1336_v39 = vsel %vm1263_vm3, %v1255_v24, 0.0  ;;  %v1259_v42 = vmul.f32 %v1186_v26, %v3574_v60  ;;  %v1058_v37 = vrot.slane %v1030_v21, %v3524_v27  ;;  %v1339_v41 = vsel %vm1263_vm3, %v1256_v25, 0.0 }
 0x253   : > { %1325 = vadd.xlane.f32.xlu1 %v1324_v44  ;;  %v1194_v30 = vrot.slane %v1060_v32, %v3527_v31  ;;  %v1182_v43 = vrot.slane %v1061_v33, %v3527_v31  ;;  %v1342_v44 = vsel %vm1263_vm3, %v1257_v34, 0.0 }
 0x254   : > { %v1348_v46 = vsel %vm1263_vm3, %v1259_v42, 0.0  ;;  %v1190_v47 = vrot.slane %v1058_v37, %v3527_v31  ;;  %v1062_v50 = vcombine.high %v1058_v37, %v1058_v37 }
 0x255   : > { %v1261_v54 = vmul.f32 %v1194_v30, %v3593_v11  ;;  %v1258_v51 = vmul.f32 %v1182_v43, %v3551_v48 }
 0x256   : > { %1328 = vadd.xlane.f32.xlu0 %v1327_v59  ;;  %v1198_v11 = vrot.slane %v1062_v50, %v3527_v31 }
 0x257   : > { %1298 = vadd.xlane.f32.xlu1 %v1297_v62  ;;  %v1260_v62 = vmul.f32 %v1190_v47, %v3584_v4  ;;  %v1354_v2 = vsel %vm1263_vm3, %v1261_v54, 0.0  ;;  %v1345_v63 = vsel %vm1263_vm3, %v1258_v51, 0.0 }
 0x258   : > { %v1262_v9 = vmul.f32 %v1198_v11, %v3568_v58 }
 0x259   : > { %v1266_v16 = vpop.xlane.xlu1 %1265  ;;  %v1351_v31 = vsel %vm1263_vm3, %v1260_v62, 0.0 }
 0x25a   : > { %v1269_v6 = vpop.xlane.xlu0 %1268  ;;  %1331 = vadd.xlane.f32.xlu0 %v1330_v12  ;;  %v1375_v49 = vrot.slane %v1266_v16, %v3485_v17 }
 0x25b   : > { %1322 = vadd.xlane.f32.xlu1 %v1321_v13  ;;  %v1379_v35 = vrot.slane %v1269_v6, %v3485_v17  ;;  %v1357_v13 = vsel %vm1263_vm3, %v1262_v9, 0.0 }
 0x25d   : > { %v1275_v38 = vpop.xlane.xlu1 %1274  ;;  %v1405_v60 = vsel %vm1404_vm4, %v1379_v35, %v1375_v49 }
 0x25e   : > { %v1272_v23 = vpop.xlane.xlu0 %1271  ;;  %1334 = vadd.xlane.f32.xlu0 %v1333_v28  ;;  %v1387_v55 = vrot.slane %v1275_v38, %v3485_v17 }
 0x25f   : > { %1310 = vadd.xlane.f32.xlu1 %v1309_v29  ;;  %v1383_v40 = vrot.slane %v1272_v23, %v3485_v17 }
 0x261   : > { %v1407_v52 = vsel %vm1406_vm5, %v1383_v40, %v1405_v60  ;;  %v1287_v56 = vpop.xlane.xlu1 %1286 }
 0x262   : > { %v1278_v36 = vpop.xlane.xlu0 %1277  ;;  %1337 = vadd.xlane.f32.xlu0 %v1336_v39  ;;  %v1409_v59 = vsel %vm1408_vm6, %v1387_v55, %v1407_v52  ;;  %v1403_v3 = vrot.slane %v1287_v56, %v3485_v17 }
 0x263   : > { %1340 = vadd.xlane.f32.xlu1 %v1339_v41  ;;  %v1391_v53 = vrot.slane %v1278_v36, %v3485_v17 }
 0x265   : > { %v1411_v48 = vsel %vm1410_vm7, %v1391_v53, %v1409_v59 }
 0x266   : > { %v1281_v27 = vpop.xlane.xlu0 %1280  ;;  %1343 = vadd.xlane.f32.xlu0 %v1342_v44 }
 0x267   : > { %v1395_v45 = vrot.slane %v1281_v27, %v3485_v17  ;;  %1349 = vadd.xlane.f32.xlu1 %v1348_v46 }
 0x269   : > { %v1413_v5 = vsel %vm1412_vm8, %v1395_v45, %v1411_v48 }
 0x26a   : > { %v1284_v61 = vpop.xlane.xlu0 %1283  ;;  %1355 = vadd.xlane.f32.xlu0 %v1354_v2 }
 0x26b   : > { %v1399_v1 = vrot.slane %v1284_v61, %v3485_v17  ;;  %1346 = vadd.xlane.f32.xlu1 %v1345_v63 }
 0x26d   : > { %v1415_v6 = vsel %vm1414_vm9, %v1399_v1, %v1413_v5 }
 0x26e   : > { %v1417_v4 = vsel %vm1416_vm10, %v1403_v3, %v1415_v6 }
 0x26f   : > { %v3727_v8 = vadd.f32 %v3634_v57, %v1417_v4  ;;  %1352 = vadd.xlane.f32.xlu1 %v1351_v31 }
 0x271   : > { %v1857_v12 = vsel %vm550_vm1, %v3727_v8, -inf }
 0x272   : > { %1858 = vmax.xlane.f32.xlu0 %v1857_v12 }
 0x273   : > { %1358 = vadd.xlane.f32.xlu1 %v1357_v13 }
 0x2ad   : > { %v1609_v14 = vpop.f32.mrf.mxu1 }
 0x2af   : > { %v2980_v15 = vpop.f32.mrf.mxu1 }
 0x2b1   : > { %v1731_v16 = vpop.f32.mrf.mxu0  ;;  %v3733_v18 = vpop.f32.mrf.mxu1 }
 0x2b3   : > { %v2985_v21 = vpop.f32.mrf.mxu0  ;;  %v2990_v23 = vpop.f32.mrf.mxu1 }
 0x2ca   : > { %v1290_v24 = vpop.xlane.xlu0 %1289 }
 0x2cb   : > { %v1504_v39 = vrot.slane %v1290_v24, %v3485_v17 }
 0x2cc   : > { %v1293_v57 = vpop.xlane.xlu1 %1292 }
 0x2cd   : > { %v1508_v35 = vrot.slane %v1293_v57, %v3485_v17 }
 0x2cf   : > { %v1314_v25 = vpop.xlane.xlu0 %1313  ;;  %v1533_v40 = vsel %vm1404_vm4, %v1508_v35, %v1504_v39 }
 0x2d0   : > { %v1296_v26 = vpop.xlane.xlu1 %1295  ;;  %v1626_v41 = vrot.slane %v1314_v25, %v3485_v17 }
 0x2d1   : > { %v1512_v36 = vrot.slane %v1296_v26, %v3485_v17 }
 0x2d3   : > { %v1320_v58 = vpop.xlane.xlu0 %1319  ;;  %v1534_v43 = vsel %vm1406_vm5, %v1512_v36, %v1533_v40 }
 0x2d4   : > { %v1317_v28 = vpop.xlane.xlu1 %1316  ;;  %v1634_v27 = vrot.slane %v1320_v58, %v3485_v17 }
 0x2d5   : > { %v1630_v42 = vrot.slane %v1317_v28, %v3485_v17 }
 0x2d7   : > { %v1305_v29 = vpop.xlane.xlu0 %1304  ;;  %v1655_v44 = vsel %vm1404_vm4, %v1630_v42, %v1626_v41 }
 0x2d8   : > { %v1302_v32 = vpop.xlane.xlu1 %1301  ;;  %v1524_v52 = vrot.slane %v1305_v29, %v3485_v17  ;;  %v1656_v51 = vsel %vm1406_vm5, %v1634_v27, %v1655_v44 }
 0x2d9   : > { %v1520_v49 = vrot.slane %v1302_v32, %v3485_v17 }
 0x2db   : > { %v1308_v33 = vpop.xlane.xlu0 %1307 }
 0x2dc   : > { %v1326_v34 = vpop.xlane.xlu1 %1325  ;;  %v1528_v59 = vrot.slane %v1308_v33, %v3485_v17 }
 0x2dd   : > { %v1642_v54 = vrot.slane %v1326_v34, %v3485_v17 }
 0x2df   : > { %v1329_v37 = vpop.xlane.xlu0 %1328 }
 0x2e0   : > { %v1299_v38 = vpop.xlane.xlu1 %1298  ;;  %v1646_v55 = vrot.slane %v1329_v37, %v3485_v17 }
 0x2e1   : > { %v1516_v30 = vrot.slane %v1299_v38, %v3485_v17 }
 0x2e3   : > { %v1535_v60 = vsel %vm1408_vm6, %v1516_v30, %v1534_v43  ;;  %v1332_v47 = vpop.xlane.xlu0 %1331 }
 0x2e4   : > { %v1536_v46 = vsel %vm1410_vm7, %v1520_v49, %v1535_v60  ;;  %v1323_v50 = vpop.xlane.xlu1 %1322  ;;  %v1650_v61 = vrot.slane %v1332_v47, %v3485_v17 }
 0x2e5   : > { %v1638_v53 = vrot.slane %v1323_v50, %v3485_v17  ;;  %v1537_v56 = vsel %vm1412_vm8, %v1524_v52, %v1536_v46 }
 0x2e6   : > { %v1538_v3 = vsel %vm1414_vm9, %v1528_v59, %v1537_v56 }
 0x2e7   : > { %v1657_v45 = vsel %vm1408_vm6, %v1638_v53, %v1656_v51  ;;  %v1335_v11 = vpop.xlane.xlu0 %1334 }
 0x2e8   : > { %v1658_v62 = vsel %vm1410_vm7, %v1642_v54, %v1657_v45  ;;  %v1311_v48 = vpop.xlane.xlu1 %1310  ;;  %v1654_v1 = vrot.slane %v1335_v11, %v3485_v17 }
 0x2e9   : > { %v1532_v2 = vrot.slane %v1311_v48, %v3485_v17  ;;  %v1659_v63 = vsel %vm1412_vm8, %v1646_v55, %v1658_v62 }
 0x2ea   : > { %v1660_v5 = vsel %vm1414_vm9, %v1650_v61, %v1659_v63 }
 0x2eb   : > { %v1539_v6 = vsel %vm1416_vm10, %v1532_v2, %v1538_v3  ;;  %v1661_v4 = vsel %vm1416_vm10, %v1654_v1, %v1660_v5  ;;  %v1338_v31 = vpop.xlane.xlu0 %1337 }
 0x2ec   : > { %v1341_v9 = vpop.xlane.xlu1 %1340  ;;  %v1610_v12 = vadd.f32 %v1609_v14, %v1539_v6  ;;  %v1732_v13 = vadd.f32 %v1731_v16, %v1661_v4  ;;  %v1748_v25 = vrot.slane %v1338_v31, %v3485_v17 }
 0x2ed   : > { %v1752_v23 = vrot.slane %v1341_v9, %v3485_v17  ;;  %v2205_v9 = vld [vmem:[%s3955_s2] sm:$0xff] }
 0x2ee   : > { %v1860_v15 = vsel %vm550_vm1, %v1610_v12, -inf  ;;  %v1863_v21 = vsel %vm550_vm1, %v1732_v13, -inf }
 0x2ef   : > { %1861 = vmax.xlane.f32.xlu1 %v1860_v15  ;;  %1864 = vmax.xlane.f32.xlu0 %v1863_v21  ;;  %v1344_v24 = vpop.xlane.xlu0 %1343  ;;  %v1777_v58 = vsel %vm1404_vm4, %v1752_v23, %v1748_v25  ;;  %v2206_v15 = vld [vmem:[%s3955_s2 + $0x8] sm:$0xff]  ;;  %v2207_v21 = vld [vmem:[%s3955_s2 + $0x10] sm:$0xff] }
 0x2f0   : > { %v1350_v57 = vpop.xlane.xlu1 %1349  ;;  %v1756_v26 = vrot.slane %v1344_v24, %v3485_v17 }
 0x2f1   : > { %v1764_v32 = vrot.slane %v1350_v57, %v3485_v17  ;;  %v2208_v57 = vld [vmem:[%s3955_s2 + $0x18] sm:$0xff] }
 0x2f2   : > { %v1778_v16 = vsel %vm1406_vm5, %v1756_v26, %v1777_v58 }
 0x2f3   : > { %v1356_v34 = vpop.xlane.xlu0 %1355 }
 0x2f4   : > { %v1347_v28 = vpop.xlane.xlu1 %1346  ;;  %v1772_v42 = vrot.slane %v1356_v34, %v3485_v17 }
 0x2f5   : > { %v1760_v14 = vrot.slane %v1347_v28, %v3485_v17 }
 0x2f7   : > { %v1779_v29 = vsel %vm1408_vm6, %v1760_v14, %v1778_v16 }
 0x2f8   : > { %v1353_v33 = vpop.xlane.xlu1 %1352  ;;  %v1780_v36 = vsel %vm1410_vm7, %v1764_v32, %v1779_v29 }
 0x2f9   : > { %v1768_v35 = vrot.slane %v1353_v33, %v3485_v17 }
 0x2fb   : > { %v1781_v39 = vsel %vm1412_vm8, %v1768_v35, %v1780_v36  ;;  %v1859_v49 = vpop.xlane.xlu0 %1858 }
 0x2fc   : > { %v1359_v37 = vpop.xlane.xlu1 %1358  ;;  %v1782_v40 = vsel %vm1414_vm9, %v1772_v42, %v1781_v39  ;;  %v1869_v44 = vsub.f32 %v3727_v8, %v1859_v49 }
 0x2fd   : > { %v1776_v38 = vrot.slane %v1359_v37, %v3485_v17 }
 0x2fe   : > { %v1873_v60 = vmul.f32 1.442695, %v1869_v44 }
 0x2ff   : > { %v1783_v41 = vsel %vm1416_vm10, %v1776_v38, %v1782_v40 }
 0x300   : > { %v1854_v30 = vadd.f32 %v3733_v18, %v1783_v41  ;;  %3115 = vpow2.f32 %v1873_v60 }
 0x302   : > { %v1866_v43 = vsel %vm550_vm1, %v1854_v30, -inf }
 0x303   : > { %1867 = vmax.xlane.f32.xlu1 %v1866_v43 }
 0x305   : > { %1901 = vrot.lane.b32.xlu0 %v3465_v10, %s3237_s30 }
 0x30d   : > { %v3116_v17 = vpop.eup %3115 }
 0x30e   : > { %v1881_v27 = vsel %vm550_vm1, %v3116_v17, 0.0 }
 0x314   : > { %1977 = vrot.lane.b32.xlu1 %v3490_v19, %s3237_s30 }
 0x324   : > { %1882 = vadd.xlane.f32.xlu0 %v1881_v27 }
 0x378   : > { %v1862_v18 = vpop.xlane.xlu1 %1861  ;;  %v1865_v46 = vpop.xlane.xlu0 %1864 }
 0x379   : > { %v1870_v47 = vsub.f32 %v1610_v12, %v1862_v18  ;;  %v1871_v50 = vsub.f32 %v1732_v13, %v1865_v46 }
 0x37b   : > { %v1875_v52 = vmul.f32 1.442695, %v1870_v47  ;;  %v1877_v53 = vmul.f32 1.442695, %v1871_v50  ;;  %v2542_v50 = vld [vmem:[%s3958_s5 + $0x18] sm:$0xff] }
 0x37c   : > { %v1902_v54 = vpop.permute.xlu0 %1901 }
 0x37d   : > { %3117 = vpow2.f32 %v1875_v52  ;;  %2992 = vmatpush3.msra.mxu0 %v1902_v54  ;;  %v2541_v52 = vld [vmem:[%s3958_s5 + $0x10] sm:$0xff]  ;;  %v2631_v54 = vld [vmem:[%s3960_s7 + $0x38] sm:$0xff] }
 0x37e   : > { %3119 = vpow2.f32 %v1877_v53  ;;  %3001 = vmatprep.subr.mxu0 %v3230_v0  ;;  %v2539_v53 = vld [vmem:[%s3958_s5] sm:$0xff] }
 0x38a   : > { %v3118_v10 = vpop.eup %3117 }
 0x38b   : > { %v3120_v8 = vpop.eup %3119  ;;  %v1884_v19 = vsel %vm550_vm1, %v3118_v10, 0.0 }
 0x38c   : > { %1885 = vadd.xlane.f32.xlu1 %v1884_v19  ;;  %v1868_v51 = vpop.xlane.xlu1 %1867  ;;  %v1887_v55 = vsel %vm550_vm1, %v3120_v8, 0.0  ;;  %v2628_v19 = vld [vmem:[%s3960_s7 + $0x20] sm:$0xff] }
 0x38d   : > { %v1872_v45 = vsub.f32 %v1854_v30, %v1868_v51  ;;  %1888 = vadd.xlane.f32.xlu0 %v1887_v55  ;;  %v2627_v51 = vld [vmem:[%s3960_s7 + $0x18] sm:$0xff] }
 0x38f   : > { %v1879_v56 = vmul.f32 1.442695, %v1872_v45 }
 0x390   : > { %v1978_v59 = vpop.permute.xlu1 %1977 }
 0x391   : > { %3121 = vpow2.f32 %v1879_v56  ;;  %2997 = vmatpush3.msra.mxu1 %v1978_v59 }
 0x392   : > { %3006 = vmatprep.subr.mxu1 %v3230_v0 }
 0x39e   : > { %v3122_v61 = vpop.eup %3121 }
 0x39f   : > { %v1890_v62 = vsel %vm550_vm1, %v3122_v61, 0.0 }
 0x3a0   : > { %1891 = vadd.xlane.f32.xlu1 %v1890_v62 }
 0x3a3   : > { %2129 = vrot.lane.b32.xlu0 %v3498_v20, %s3237_s30 }
 0x3ad   : > { %v1883_v11 = vpop.xlane.xlu0 %1882 }
 0x3ae   : > { %3123 = vrcp.f32 %v1883_v11  ;;  %v2866_v11 = vld [vmem:[%s3963_s10] ss:$0 sm:$0xff] }
 0x3b1   : > { %2053 = vrot.lane.b32.xlu1 %v3504_v22, %s3237_s30 }
 0x3bb   : > { %v3124_v48 = vpop.eup %3123 }
 0x3bc   : > { %v1897_v1 = vmul.f32 %v3124_v48, %v3116_v17 }
 0x3be   : > { %2994 = vmatmul.mubr.msk.f32.vlgmr.msra.gmra.mxu0 %vm550_vm1, %v1897_v1 }
 0x3bf   : > { %3003 = vmatprep.mubr.msk.f32.mxu0 %vm3231_vm0, %v3230_v0 }
 0x415   : > { %v1886_v2 = vpop.xlane.xlu1 %1885 }
 0x416   : > { %3125 = vrcp.f32 %v1886_v2  ;;  %v1889_v63 = vpop.xlane.xlu0 %1888  ;;  %v2626_v2 = vld [vmem:[%s3960_s7 + $0x10] sm:$0xff] }
 0x417   : > { %3127 = vrcp.f32 %v1889_v63  ;;  %v2625_v63 = vld [vmem:[%s3960_s7 + $0x8] sm:$0xff] }
 0x41a   : > { %v2130_v6 = vpop.permute.xlu0 %2129 }
 0x423   : > { %v3126_v3 = vpop.eup %3125 }
 0x424   : > { %v1898_v5 = vmul.f32 %v3126_v3, %v3118_v10  ;;  %v3128_v22 = vpop.eup %3127  ;;  %v2630_v10 = vld [vmem:[%s3960_s7 + $0x30] sm:$0xff]  ;;  %v2624_v3 = vld [vmem:[%s3960_s7] sm:$0xff] }
 0x425   : > { %v1899_v31 = vmul.f32 %v3128_v22, %v3120_v8  ;;  %v2629_v8 = vld [vmem:[%s3960_s7 + $0x28] sm:$0xff] }
 0x426   : > { %2999 = vmatmul.mubr.msk.f32.vlgmr.msra.gmra.mxu1 %vm550_vm1, %v1898_v5  ;;  %v2867_v5 = vld [vmem:[%s3959_s6] ss:$0 sm:$0xff] }
 0x427   : > { %3007 = vmatpush3.msra.mxu1 %v2130_v6  ;;  %3008 = vmatprep.mubr.msk.f32.mxu1 %vm3231_vm0, %v3230_v0 }
 0x428   : > { %3016 = vmatprep.subr.mxu1 %v3230_v0 }
 0x429   : > { %v1892_v20 = vpop.xlane.xlu1 %1891 }
 0x42a   : > { %3129 = vrcp.f32 %v1892_v20 }
 0x42d   : > { %v2054_v4 = vpop.permute.xlu1 %2053 }
 0x42e   : > { %3002 = vmatpush3.msra.mxu0 %v2054_v4 }
 0x42f   : > { %3004 = vmatmul.mubr.msk.f32.vlgmr.msra.gmra.mxu0 %vm550_vm1, %v1899_v31  ;;  %3011 = vmatprep.subr.mxu0 %v3230_v0  ;;  %v2869_v31 = vld [vmem:[%s3961_s8] ss:$0 sm:$0xff] }
 0x430   : > { %3012 = vmatpush3.msra.mxu0 %v2205_v9  ;;  %3013 = vmatprep.mubr.msk.f32.mxu0 %vm3231_vm0, %v3230_v0 }
 0x431   : > { %3021 = vmatprep.subr.mxu0 %v3230_v0 }
 0x437   : > { %v3130_v12 = vpop.eup %3129 }
 0x438   : > { %v1900_v13 = vmul.f32 %v3130_v12, %v3122_v61  ;;  %v2865_v61 = vld [vmem:[%s3962_s9] ss:$0 sm:$0xff] }
 0x43a   : > { %3009 = vmatmul.mubr.msk.f32.vlgmr.msra.gmra.mxu1 %vm550_vm1, %v1900_v13 }
 0x43b   : > { %3018 = vmatprep.mubr.msk.f32.mxu1 %vm3231_vm0, %v3230_v0  ;;  %3017 = vmatpush3.msra.mxu1 %v2206_v15 }
 0x43c   : > { %3026 = vmatprep.subr.mxu1 %v3230_v0 }
 0x47e   : > { %v1973_v23 = vpop.f32.mrf.mxu0 }
 0x47f   : > { %3014 = vmatmul.mubr.msk.f32.vlgmr.msra.gmra.mxu0 %vm550_vm1, %v1973_v23 }
 0x480   : > { %v2995_v24 = vpop.f32.mrf.mxu0  ;;  %3022 = vmatpush3.msra.mxu0 %v2207_v21  ;;  %3023 = vmatprep.mubr.msk.f32.mxu0 %vm3231_vm0, %v3230_v0 }
 0x481   : > { %3031 = vmatprep.subr.mxu0 %v3230_v0 }
 0x4e6   : > { %v2049_v25 = vpop.f32.mrf.mxu1 }
 0x4e7   : > { %3019 = vmatmul.mubr.msk.f32.vlgmr.msra.gmra.mxu1 %vm550_vm1, %v2049_v25 }
 0x4e8   : > { %v3000_v26 = vpop.f32.mrf.mxu1  ;;  %3027 = vmatpush3.msra.mxu1 %v2208_v57  ;;  %3028 = vmatprep.mubr.msk.f32.mxu1 %vm3231_vm0, %v3230_v0 }
 0x4e9   : > { %3042 = vmatprep.subr.mxu1 %v3230_v0 }
 0x4ef   : > { %v2125_v58 = vpop.f32.mrf.mxu0 }
 0x4f0   : > { %3024 = vmatmul.mubr.msk.f32.vlgmr.msra.gmra.mxu0 %vm550_vm1, %v2125_v58 }
 0x4f1   : > { %v3005_v28 = vpop.f32.mrf.mxu0  ;;  %3039 = vmatprep.mubr.msk.f32.mxu0 %vm3231_vm0, %v3230_v0  ;;  %3032 = vmatpush3.msra.mxu0 %v2542_v50 }
 0x4f2   : > { %3033 = vmatprep.subr.mxu0 %v3230_v0 }
 0x4f3   : > { %3034 = vmatpush3.msra.mxu0 %v2541_v52 }
 0x4f4   : > { %3035 = vmatprep.subr.mxu0 %v3230_v0 }
 0x4fa   : > { %v2201_v14 = vpop.f32.mrf.mxu1 }
 0x4fb   : > { %3029 = vmatmul.mubr.msk.f32.vlgmr.msra.gmra.mxu1 %vm550_vm1, %v2201_v14 }
 0x4fc   : > { %v3010_v16 = vpop.f32.mrf.mxu1  ;;  %3058 = vmatprep.mubr.msk.f32.mxu1 %vm3231_vm0, %v3230_v0  ;;  %3043 = vmatpush3.msra.mxu1 %v2631_v54 }
 0x4fd   : > { %3044 = vmatprep.subr.mxu1 %v3230_v0  ;;  %v2871_v16 = vld [vmem:[%s3964_s11] ss:$0 sm:$0xff] }
 0x4fe   : > { %3045 = vmatpush3.msra.mxu1 %v2630_v10 }
 0x4ff   : > { %3046 = vmatprep.subr.mxu1 %v3230_v0 }
 0x500   : > { %3047 = vmatpush3.msra.mxu1 %v2629_v8 }
 0x501   : > { %3048 = vmatprep.subr.mxu1 %v3230_v0 }
 0x502   : > { %3049 = vmatpush3.msra.mxu1 %v2628_v19 }
 0x503   : > { %3050 = vmatprep.subr.mxu1 %v3230_v0 }
 0x504   : > { %3051 = vmatpush3.msra.mxu1 %v2627_v51 }
 0x505   : > { %3052 = vmatprep.subr.mxu1 %v3230_v0 }
 0x506   : > { %3053 = vmatpush3.msra.mxu1 %v2626_v2 }
 0x507   : > { %3054 = vmatprep.subr.mxu1 %v3230_v0 }
 0x508   : > { %3055 = vmatpush3.msra.mxu1 %v2625_v63 }
 0x509   : > { %3056 = vmatprep.subr.mxu1 %v3230_v0 }
 0x50a   : > { %3057 = vmatpush3.msra.mxu1 %v2624_v3 }
 0x53f   : > { %v2278_v29 = vpop.f32.mrf.mxu0 }
 0x540   : > { %v2501_v42 = vsel %vm461_vm2, %v2278_v29, 0.0 }
 0x541   : > { %v3015_v32 = vpop.f32.mrf.mxu0 }
 0x542   : > { %v2872_v32 = vld [vmem:[%s3965_s12] ss:$0 sm:$0xff] }
 0x5a7   : > { %v2351_v33 = vpop.f32.mrf.mxu1 }
 0x5a8   : > { %v2502_v39 = vsel %vm461_vm2, %v2351_v33, 0.0 }
 0x5a9   : > { %v3020_v34 = vpop.f32.mrf.mxu1  ;;  %v2503_v38 = vadd.f32 %v2502_v39, %v2501_v42 }
 0x5b0   : > { %v2424_v35 = vpop.f32.mrf.mxu0 }
 0x5b1   : > { %v2504_v37 = vsel %vm461_vm2, %v2424_v35, 0.0 }
 0x5b2   : > { %v3025_v36 = vpop.f32.mrf.mxu0  ;;  %v2505_v40 = vadd.f32 %v2504_v37, %v2503_v38 }
 0x5bb   : > { %v2497_v41 = vpop.f32.mrf.mxu1 }
 0x5bc   : > { %v2506_v30 = vsel %vm461_vm2, %v2497_v41, 0.0 }
 0x5bd   : > { %v2507_v43 = vadd.f32 %v2506_v30, %v2505_v40  ;;  %v3030_v49 = vpop.f32.mrf.mxu1 }
 0x5bf   : > { %v2508_v44 = vadd.f32 %v2507_v43, %v3445_v7  ;;  %v2540_v7 = vld [vmem:[%s3958_s5 + $0x8] sm:$0xff] }
 0x5c0   : > { %3036 = vmatpush3.msra.mxu0 %v2540_v7 }
 0x5c1   : > { %v2509_v60 = vsel %vm461_vm2, %v2508_v44, 0.0  ;;  %3037 = vmatprep.subr.mxu0 %v3230_v0 }
 0x5c2   : > { %2510 = vadd.xlane.f32.xlu1 %v2509_v60  ;;  %3038 = vmatpush3.msra.mxu0 %v2539_v53 }
 0x64b   : > { %v2511_v17 = vpop.xlane.xlu1 %2510 }
 0x64c   : > { %v2513_v27 = vmul.f32 0.03125, %v2511_v17 }
 0x64e   : > { %v2514_v18 = vsub.f32 %v2508_v44, %v2513_v27 }
 0x650   : > { %v2515_v46 = vmul.f32 %v2514_v18, %v2514_v18 }
 0x652   : > { %v2516_v47 = vsel %vm461_vm2, %v2515_v46, 0.0 }
 0x653   : > { %2517 = vadd.xlane.f32.xlu0 %v2516_v47 }
 0x6dc   : > { %v2518_v55 = vpop.xlane.xlu0 %2517 }
 0x6dd   : > { %v2519_v45 = vmul.f32 0.03125, %v2518_v55 }
 0x6df   : > { %v2520_v56 = vadd.f32 1e-05, %v2519_v45 }
 0x6e1   : > { %3131 = vrsqrt.f32 %v2520_v56 }
 0x6ee   : > { %v3132_v59 = vpop.eup %3131 }
 0x6ef   : > { %v2522_v62 = vmul.f32 %v3132_v59, %v2514_v18 }
 0x6f1   : > { %v2530_v48 = vmul.f32 %v2865_v61, %v2522_v62 }
 0x6f3   : > { %v2538_v1 = vadd.f32 %v2866_v11, %v2530_v48 }
 0x6f5   : > { %3040 = vmatmul.mubr.msk.f32.vlgmr.msra.gmra.mxu0 %vm461_vm2, %v2538_v1 }
 0x7b5   : > { %v2619_v6 = vpop.f32.mrf.mxu0 }
 0x7b6   : > { %v2620_v20 = vadd.f32 %v2867_v5, %v2619_v6 }
 0x7b7   : > { %v3041_v22 = vpop.f32.mrf.mxu0 }
 0x7b8   : > { %v2623_v4 = vmax.f32 %v2620_v20, 0.0 }
 0x7ba   : > { %3059 = vmatmul.mubr.msk.f32.vlgmr.msra.gmra.mxu1 %vm2639_vm11, %v2623_v4 }
 0x87a   : > { %v2709_v9 = vpop.f32.mrf.mxu1 }
 0x87b   : > { %v2710_v12 = vadd.f32 %v2869_v31, %v2709_v9 }
 0x87c   : > { %v3060_v13 = vpop.f32.mrf.mxu1 }
 0x87d   : > { %v2713_v15 = vadd.f32 %v2710_v12, %v2538_v1 }
 0x87f   : > { %v2714_v0 = vsel %vm461_vm2, %v2713_v15, 0.0 }
 0x880   : > { %2715 = vadd.xlane.f32.xlu0 %v2714_v0 }
 0x909   : > { %v2716_v21 = vpop.xlane.xlu0 %2715 }
 0x90a   : > { %v2717_v23 = vmul.f32 0.03125, %v2716_v21 }
 0x90c   : > { %v2718_v24 = vsub.f32 %v2713_v15, %v2717_v23 }
 0x90e   : > { %v2719_v57 = vmul.f32 %v2718_v24, %v2718_v24 }
 0x910   : > { %v2720_v25 = vsel %vm461_vm2, %v2719_v57, 0.0 }
 0x911   : > { %2721 = vadd.xlane.f32.xlu1 %v2720_v25 }
 0x99a   : > { %v2722_v26 = vpop.xlane.xlu1 %2721 }
 0x99b   : > { %v2723_v58 = vmul.f32 0.03125, %v2722_v26 }
 0x99d   : > { %v2724_v28 = vadd.f32 1e-05, %v2723_v58 }
 0x99f   : > { %3133 = vrsqrt.f32 %v2724_v28 }
 0x9ac   : > { %v3134_v14 = vpop.eup %3133 }
 0x9ad   : > { %v2726_v29 = vmul.f32 %v3134_v14, %v2718_v24 }
 0x9af   : > { %v2734_v33 = vmul.f32 %v2871_v16, %v2726_v29 }
 0x9b1   : > { %v2742_v34 = vadd.f32 %v2872_v32, %v2734_v33 }
 0x9b3   : > { %2743 = vst.msk [vmem:[%s455_s16] sm:$0xff] %vm461_vm2, %v2742_v34 }
 0x9b4   : > { %3176 = shalt.err (!%p3173_p10)
}
 0x9b5   : > { %s3177_s19 = scalar_lea.hbm %s2756_s27, 128  ;;  %s3181_s15 = scalar_lea.hbm %s3989_s24, 256 }
 0x9b6   : > { %p3178_p2 = scmp.ne.s32.totalorder %s2756_s27, %s3177_s19  ;;  %p3182_p7 = scmp.lt.s32.totalorder %s2756_s27, %s3989_s24 }
 0x9b7   : > { %p3183_p0 = scmp.lt.s32.totalorder %s3181_s15, %s3177_s19 }
 0x9b8   : > { %p3179_p4 = pnand %p3178_p2, %p3990_p12 }
 0x9b9   : > { %p3184_p6 = por %p3183_p0, %p3182_p7 }
 0x9ba   : > { %p3180_p9 = pneg %p3179_p4 }
 0x9bc   : > { %p3185_p11 = pnand %p3184_p6, %p3180_p9 }
 0x9be   : > { %3188 = shalt.err (!%p3185_p11)
}
 0x9bf   : > { %3063 = dma.vmem_to_hbm [thread:$0]  (%p3990_p12), %s2759_s22, 128, %s2756_s27, %s2745_s14  }
 0x9c0 PF: > { %s3991_s23 = sld [smem:[#allocation8_spill]]  ;;  %p3994_p1 = scmp.ge.s32.totalorder %s3227_s28, 2 }
 0x9c1   : > { %s3992_s17 = sld [smem:[#allocation12_spill]] }
 0x9c6   : > { %s2770_s25 = sand.u32 1, %s3991_s23  }
 0x9c7   : > { %p3993_p13 = scmp.ne.s32.totalorder %s3992_s17, 0  ;;  %s2771_s29 = scalar_lea.sflag [#allocation4], %s2770_s25 }
 0x9c9   : > { %p3070_p3 = pnand %p3994_p1, %p3993_p13 }
 0x9cb   : > { %p3071_p5 = pneg %p3070_p3 }
 0x9cd   : > { %3210 = dma.done.wait (%p3071_p5), %s2771_s29, 128  }
 0x9ce   : > { %3212 = vsyncadd (%p3071_p5), %s2771_s29, 4294967168  ;;  %s3995_s28 = sld [smem:[#allocation10_spill]]  ;;  %s3998_s25 = smov %s3219_s26 }
 0x9cf   : > { %s3996_s13 = sld [smem:[#allocation9_spill]] }
 0x9d0   : > { %s3997_s27 = sld [smem:[#allocation11_spill]] }
 0x9d4   : > { %p26_p8 = scmp.ge.s32.totalorder %s3995_s28, 4  }
 0x9d5   : > { %s3999_s26 = smov %s3996_s13 }
 0x9d6   :  { %28 = sbr.rel (!%p26_p8) target bundleno = 7 (0x7), region = 117 }
 0x9db   :  { %2776 = vsyncpa [#allocation3], 1 }
 0x9dc   :  { %2778 = vsyncpa [#allocation3 + $0x1], 1 }
 0x9dd   :  { %2779 = vsyncpa [#allocation4], 1 }
 0x9de   :  { %2781 = vsyncpa [#allocation4 + $0x1], 1 }

</bundles_post_ra>
